<compile_context>
chip_gen: v6e
topology: v6e:2x2x1
jax: 0.10.0
libtpu: 0.0.40
codegen_flags: <defaults>
</compile_context>

<pallas_src>
import functools

import jax
import jax.numpy as jnp
from jax.experimental import pallas as pl
from jax.experimental.pallas import tpu as pltpu


def _rc_kernel(x_ref, w_ref, b_ref, o_ref, patch_ref, *, ksize, pad, activated):
    # x_ref    : (1, Cin, H, W)    raw (unpadded) NCHW input, one batch element
    # w_ref    : (Cout, k*k*Cin)   im2col-folded weights, col = (di*k+dj)*Cin+ci
    # b_ref    : (Cout, 1)         bias column (broadcasts along lanes)
    # o_ref    : (1, Cout, Ho*Wo)  lane-dense, NCHW-flat output
    # patch_ref: (k*k*Cin, Ho*Wo)  f32 VMEM scratch for the im2col patch
    _, Cin, H, W = x_ref.shape
    Hp, Wp = H + 2 * pad, W + 2 * pad
    Ho, Wo = Hp - ksize + 1, Wp - ksize + 1

    x = x_ref[0]                                            # (Cin, H, W)

    # Reflection pad in VMEM (matches nn.ReflectionPad2d / jnp.pad 'reflect').
    if pad > 0:
        rows = ([x[:, p:p + 1, :] for p in range(pad, 0, -1)]
                + [x]
                + [x[:, H - 2 - q:H - 1 - q, :] for q in range(pad)])
        xh = jnp.concatenate(rows, axis=1)                  # (Cin, Hp, W)
        cols = ([xh[:, :, p:p + 1] for p in range(pad, 0, -1)]
                + [xh]
                + [xh[:, :, W - 2 - q:W - 1 - q] for q in range(pad)])
        xp = jnp.concatenate(cols, axis=2)                  # (Cin, Hp, Wp)
    else:
        xp = x

    # im2col: write each of the k*k taps into the scratch at a static sublane
    # offset -> one (Cout,K) x (K,M) GEMM instead of k*k tiny matmuls.
    for di in range(ksize):
        for dj in range(ksize):
            tap = xp[:, di:di + Ho, dj:dj + Wo]             # (Cin, Ho, Wo)
            row0 = (di * ksize + dj) * Cin
            patch_ref[row0:row0 + Cin, :] = tap.reshape(Cin, Ho * Wo)

    # (Cout, K) @ (K, M) -> (Cout, M): output already channel-major /
    # lane-dense, so no post-GEMM transpose is needed.
    out = jax.lax.dot_general(
        w_ref[...], patch_ref[...],
        dimension_numbers=(((1,), (0,)), ((), ())),
        preferred_element_type=jnp.float32)                 # (Cout, Ho*Wo)
    out = out + b_ref[...]
    if activated:
        out = jnp.maximum(out, 0.0)
    o_ref[0] = out.astype(o_ref.dtype)


def rc_forward(x_nchw, weight_oihw, bias, *, pad_size=1, activated=True):
    """Forward pass of RC: ReflectionPad2d(pad_size) + Conv2d(k) [+ ReLU].

    x_nchw:      (N, Cin, H, W)
    weight_oihw: (Cout, Cin, k, k)   (PyTorch Conv2d layout)
    bias:        (Cout,)
    returns:     (N, Cout, H + 2*pad - k + 1, W + 2*pad - k + 1)
    """
    N, Cin, H, W = x_nchw.shape
    Cout, Cin_w, k, k2 = weight_oihw.shape
    assert Cin_w == Cin and k == k2
    assert H > pad_size and W > pad_size, "reflection pad requires pad < H, W"

    Hp, Wp = H + 2 * pad_size, W + 2 * pad_size
    Ho, Wo = Hp - k + 1, Wp - k + 1
    assert Ho > 0 and Wo > 0, "kernel larger than padded input"
    K = k * k * Cin
    M = Ho * Wo

    x_f32 = x_nchw.astype(jnp.float32)
    # OIHW -> (Cout, k, k, Cin) -> (Cout, K); column index (di*k+dj)*Cin + ci
    # matches the tap ordering used inside the kernel.
    w2 = jnp.transpose(weight_oihw, (0, 2, 3, 1)).reshape(Cout, K)
    w2 = w2.astype(jnp.float32)
    b2 = bias.reshape(Cout, 1).astype(jnp.float32)

    # VMEM budget: double-buffered pipelined blocks + in-kernel intermediates
    # (padded tile + im2col patch + accumulator), per the review.
    f32b = 4
    block_bytes = 2 * (Cin * H * W + Cout * M) * f32b + 2 * (Cout * K + Cout) * f32b
    interm_bytes = (Cin * Hp * Wp + K * M + Cout * M) * f32b
    needed = block_bytes + interm_bytes + (2 << 20)
    try:
        phys_vmem = pltpu.get_tpu_info().vmem_capacity_bytes
    except Exception:
        phys_vmem = 64 << 20            # conservative: v7x per-TensorCore VMEM
    vmem_limit = int(min(max(needed, 16 << 20), int(0.8 * phys_vmem)))
    # TODO(synk): when `needed` approaches the cap (large H*W*Cin), spatial row
    # tiling with a halo becomes mandatory (see module-level TODO).

    kernel = functools.partial(_rc_kernel, ksize=k, pad=pad_size,
                               activated=activated)

    out_flat = pl.pallas_call(
        kernel,
        out_shape=jax.ShapeDtypeStruct((N, Cout, M), x_nchw.dtype),
        grid_spec=pltpu.PrefetchScalarGridSpec(
            num_scalar_prefetch=0,
            grid=(N,),
            in_specs=[
                # raw per-batch NCHW tile (full channel + spatial extent)
                pl.BlockSpec((1, Cin, H, W), lambda n: (n, 0, 0, 0)),
                # folded weights / bias: same block every grid step (no re-DMA)
                pl.BlockSpec((Cout, K), lambda n: (0, 0)),
                pl.BlockSpec((Cout, 1), lambda n: (0, 0)),
            ],
            # Lane-dense, NCHW-flat output block: last dim Ho*Wo (multiple of
            # 128 for typical image sizes) -> unmasked full-width stores.
            out_specs=pl.BlockSpec((1, Cout, M), lambda n: (n, 0, 0)),
            scratch_shapes=[pltpu.VMEM((K, M), jnp.float32)],
        ),
        compiler_params=pltpu.CompilerParams(
            dimension_semantics=("parallel",),
            vmem_limit_bytes=vmem_limit,
        ),
    )(x_f32, w2, b2)

    # Free (contiguous) reshape to NCHW.
    return out_flat.reshape(N, Cout, Ho, Wo)


def init_rc_params(key, in_channels, out_channels, kernel_size=3):
    """Deterministic Conv2d-style init (uniform in +/- 1/sqrt(fan_in))."""
    kw, kb = jax.random.split(key)
    fan_in = in_channels * kernel_size * kernel_size
    bound = 1.0 / jnp.sqrt(jnp.float32(fan_in))
    weight = jax.random.uniform(
        kw, (out_channels, in_channels, kernel_size, kernel_size),
        minval=-bound, maxval=bound, dtype=jnp.float32)
    bias = jax.random.uniform(
        kb, (out_channels,), minval=-bound, maxval=bound, dtype=jnp.float32)
    return weight, bias


if __name__ == "__main__":
    key = jax.random.PRNGKey(0)
    k_x, k_p = jax.random.split(key)

    N, Cin, H, W = 2, 4, 16, 16
    Cout = 8

    x = jax.random.normal(k_x, (N, Cin, H, W), dtype=jnp.float32)
    weight, bias = init_rc_params(k_p, Cin, Cout, kernel_size=3)

    out = rc_forward(x, weight, bias, pad_size=1, activated=True)
    out = jax.block_until_ready(out)
    assert out.shape == (N, Cout, H, W), out.shape

    # Reference: reflection pad + VALID conv + bias + ReLU, all in f32.
    xpad = jnp.pad(x, ((0, 0), (0, 0), (1, 1), (1, 1)), mode="reflect")
    ref = jax.lax.conv_general_dilated(
        xpad, weight, window_strides=(1, 1), padding="VALID",
        dimension_numbers=("NCHW", "OIHW", "NCHW"),
        precision=jax.lax.Precision.HIGHEST)
    ref = jnp.maximum(ref + bias.reshape(1, -1, 1, 1), 0.0)
    max_err = float(jnp.max(jnp.abs(out - ref)))
    assert jnp.allclose(out, ref, atol=1e-2, rtol=1e-2), max_err

    print("KERNEL_OK")
</pallas_src>

<mosaic_0001>
module attributes {stable_mosaic.version = 11 : i64} {
  func.func @_rc_kernel(%arg0: i32, %arg1: memref<1x4x16x16xf32, #tpu.memory_space<vmem>>, %arg2: memref<8x36xf32, #tpu.memory_space<vmem>>, %arg3: memref<8x1xf32, #tpu.memory_space<vmem>>, %arg4: memref<1x8x256xf32, #tpu.memory_space<vmem>>, %arg5: memref<36x256xf32, #tpu.memory_space<vmem>>) attributes {dimension_semantics = [#tpu.dimension_semantics<parallel>], iteration_bounds = array<i64: 2>, scalar_prefetch = 0 : i64, scratch_operands = 1 : i64, tpu.core_type = #tpu.core_type<tc>, window_params = [{transform_indices = @transform_0, window_bounds = array<i64: 1, 4, 16, 16>}, {pipeline_mode = #tpu.pipeline_mode<synchronous>, transform_indices = @transform_1, window_bounds = array<i64: 8, 36>}, {pipeline_mode = #tpu.pipeline_mode<synchronous>, transform_indices = @transform_2, window_bounds = array<i64: 8, 1>}, {transform_indices = @transform_3, window_bounds = array<i64: 1, 8, 256>}]} {
    %c0 = arith.constant 0 : index
    %c0_0 = arith.constant 0 : index
    %c0_1 = arith.constant 0 : index
    %c0_2 = arith.constant 0 : index
    %0 = vector.load %arg1[%c0, %c0_0, %c0_1, %c0_2] : memref<1x4x16x16xf32, #tpu.memory_space<vmem>>, vector<1x4x16x16xf32>
    %1 = vector.shape_cast %0 : vector<1x4x16x16xf32> to vector<4x16x16xf32>
    %2 = vector.extract_strided_slice %1 {offsets = [0, 1, 0], sizes = [4, 1, 16], strides = [1, 1, 1]} : vector<4x16x16xf32> to vector<4x1x16xf32>
    %3 = vector.extract_strided_slice %1 {offsets = [0, 14, 0], sizes = [4, 1, 16], strides = [1, 1, 1]} : vector<4x16x16xf32> to vector<4x1x16xf32>
    %4 = tpu.concatenate %2, %1, %3 in 1 : vector<4x1x16xf32>, vector<4x16x16xf32>, vector<4x1x16xf32> -> vector<4x18x16xf32>
    %5 = vector.extract_strided_slice %4 {offsets = [0, 0, 1], sizes = [4, 18, 1], strides = [1, 1, 1]} : vector<4x18x16xf32> to vector<4x18x1xf32>
    %6 = vector.extract_strided_slice %4 {offsets = [0, 0, 14], sizes = [4, 18, 1], strides = [1, 1, 1]} : vector<4x18x16xf32> to vector<4x18x1xf32>
    %7 = tpu.concatenate %5, %4, %6 in 2 : vector<4x18x1xf32>, vector<4x18x16xf32>, vector<4x18x1xf32> -> vector<4x18x18xf32>
    %8 = vector.extract_strided_slice %7 {offsets = [0, 0, 0], sizes = [4, 16, 16], strides = [1, 1, 1]} : vector<4x18x18xf32> to vector<4x16x16xf32>
    %9 = vector.shape_cast %8 : vector<4x16x16xf32> to vector<4x256xf32>
    %c0_3 = arith.constant 0 : index
    %c0_4 = arith.constant 0 : index
    %10 = vector.load %arg5[%c0_3, %c0_4] : memref<36x256xf32, #tpu.memory_space<vmem>>, vector<4x256xf32>
    tpu.vector_store %arg5[%c0_3, %c0_4], %9 {strides = array<i32>} : memref<36x256xf32, #tpu.memory_space<vmem>>, vector<4x256xf32>,
    %11 = vector.extract_strided_slice %7 {offsets = [0, 0, 1], sizes = [4, 16, 16], strides = [1, 1, 1]} : vector<4x18x18xf32> to vector<4x16x16xf32>
    %12 = vector.shape_cast %11 : vector<4x16x16xf32> to vector<4x256xf32>
    %c4 = arith.constant 4 : index
    %c0_5 = arith.constant 0 : index
    %13 = vector.load %arg5[%c4, %c0_5] : memref<36x256xf32, #tpu.memory_space<vmem>>, vector<4x256xf32>
    tpu.vector_store %arg5[%c4, %c0_5], %12 {strides = array<i32>} : memref<36x256xf32, #tpu.memory_space<vmem>>, vector<4x256xf32>,
    %14 = vector.extract_strided_slice %7 {offsets = [0, 0, 2], sizes = [4, 16, 16], strides = [1, 1, 1]} : vector<4x18x18xf32> to vector<4x16x16xf32>
    %15 = vector.shape_cast %14 : vector<4x16x16xf32> to vector<4x256xf32>
    %c8 = arith.constant 8 : index
    %c0_6 = arith.constant 0 : index
    %16 = vector.load %arg5[%c8, %c0_6] : memref<36x256xf32, #tpu.memory_space<vmem>>, vector<4x256xf32>
    tpu.vector_store %arg5[%c8, %c0_6], %15 {strides = array<i32>} : memref<36x256xf32, #tpu.memory_space<vmem>>, vector<4x256xf32>,
    %17 = vector.extract_strided_slice %7 {offsets = [0, 1, 0], sizes = [4, 16, 16], strides = [1, 1, 1]} : vector<4x18x18xf32> to vector<4x16x16xf32>
    %18 = vector.shape_cast %17 : vector<4x16x16xf32> to vector<4x256xf32>
    %c12 = arith.constant 12 : index
    %c0_7 = arith.constant 0 : index
    %19 = vector.load %arg5[%c12, %c0_7] : memref<36x256xf32, #tpu.memory_space<vmem>>, vector<4x256xf32>
    tpu.vector_store %arg5[%c12, %c0_7], %18 {strides = array<i32>} : memref<36x256xf32, #tpu.memory_space<vmem>>, vector<4x256xf32>,
    %20 = vector.extract_strided_slice %7 {offsets = [0, 1, 1], sizes = [4, 16, 16], strides = [1, 1, 1]} : vector<4x18x18xf32> to vector<4x16x16xf32>
    %21 = vector.shape_cast %20 : vector<4x16x16xf32> to vector<4x256xf32>
    %c16 = arith.constant 16 : index
    %c0_8 = arith.constant 0 : index
    %22 = vector.load %arg5[%c16, %c0_8] : memref<36x256xf32, #tpu.memory_space<vmem>>, vector<4x256xf32>
    tpu.vector_store %arg5[%c16, %c0_8], %21 {strides = array<i32>} : memref<36x256xf32, #tpu.memory_space<vmem>>, vector<4x256xf32>,
    %23 = vector.extract_strided_slice %7 {offsets = [0, 1, 2], sizes = [4, 16, 16], strides = [1, 1, 1]} : vector<4x18x18xf32> to vector<4x16x16xf32>
    %24 = vector.shape_cast %23 : vector<4x16x16xf32> to vector<4x256xf32>
    %c20 = arith.constant 20 : index
    %c0_9 = arith.constant 0 : index
    %25 = vector.load %arg5[%c20, %c0_9] : memref<36x256xf32, #tpu.memory_space<vmem>>, vector<4x256xf32>
    tpu.vector_store %arg5[%c20, %c0_9], %24 {strides = array<i32>} : memref<36x256xf32, #tpu.memory_space<vmem>>, vector<4x256xf32>,
    %26 = vector.extract_strided_slice %7 {offsets = [0, 2, 0], sizes = [4, 16, 16], strides = [1, 1, 1]} : vector<4x18x18xf32> to vector<4x16x16xf32>
    %27 = vector.shape_cast %26 : vector<4x16x16xf32> to vector<4x256xf32>
    %c24 = arith.constant 24 : index
    %c0_10 = arith.constant 0 : index
    %28 = vector.load %arg5[%c24, %c0_10] : memref<36x256xf32, #tpu.memory_space<vmem>>, vector<4x256xf32>
    tpu.vector_store %arg5[%c24, %c0_10], %27 {strides = array<i32>} : memref<36x256xf32, #tpu.memory_space<vmem>>, vector<4x256xf32>,
    %29 = vector.extract_strided_slice %7 {offsets = [0, 2, 1], sizes = [4, 16, 16], strides = [1, 1, 1]} : vector<4x18x18xf32> to vector<4x16x16xf32>
    %30 = vector.shape_cast %29 : vector<4x16x16xf32> to vector<4x256xf32>
    %c28 = arith.constant 28 : index
    %c0_11 = arith.constant 0 : index
    %31 = vector.load %arg5[%c28, %c0_11] : memref<36x256xf32, #tpu.memory_space<vmem>>, vector<4x256xf32>
    tpu.vector_store %arg5[%c28, %c0_11], %30 {strides = array<i32>} : memref<36x256xf32, #tpu.memory_space<vmem>>, vector<4x256xf32>,
    %32 = vector.extract_strided_slice %7 {offsets = [0, 2, 2], sizes = [4, 16, 16], strides = [1, 1, 1]} : vector<4x18x18xf32> to vector<4x16x16xf32>
    %33 = vector.shape_cast %32 : vector<4x16x16xf32> to vector<4x256xf32>
    %c32 = arith.constant 32 : index
    %c0_12 = arith.constant 0 : index
    %34 = vector.load %arg5[%c32, %c0_12] : memref<36x256xf32, #tpu.memory_space<vmem>>, vector<4x256xf32>
    tpu.vector_store %arg5[%c32, %c0_12], %33 {strides = array<i32>} : memref<36x256xf32, #tpu.memory_space<vmem>>, vector<4x256xf32>,
    %c0_13 = arith.constant 0 : index
    %c0_14 = arith.constant 0 : index
    %35 = vector.load %arg2[%c0_13, %c0_14] : memref<8x36xf32, #tpu.memory_space<vmem>>, vector<8x36xf32>
    %c0_15 = arith.constant 0 : index
    %c0_16 = arith.constant 0 : index
    %36 = vector.load %arg5[%c0_15, %c0_16] : memref<36x256xf32, #tpu.memory_space<vmem>>, vector<36x256xf32>
    %cst = arith.constant dense<0.000000e+00> : vector<8x256xf32>
    %37 = tpu.matmul %35, %36, %cst {dimension_numbers = #tpu.dot_dimension_numbers<[1], [0], [0], [1], [0, 0, 1, 1], [], []>} : vector<8x36xf32>, vector<36x256xf32>, vector<8x256xf32> -> vector<8x256xf32>
    %c0_17 = arith.constant 0 : index
    %c0_18 = arith.constant 0 : index
    %38 = vector.load %arg3[%c0_17, %c0_18] : memref<8x1xf32, #tpu.memory_space<vmem>>, vector<8x1xf32>
    %39 = vector.broadcast %38 : vector<8x1xf32> to vector<8x256xf32>
    %40 = arith.addf %37, %39 : vector<8x256xf32>
    %cst_19 = arith.constant 0.000000e+00 : f32
    %41 = vector.broadcast %cst_19 : f32 to vector<8x256xf32>
    %42 = arith.maximumf %40, %41 : vector<8x256xf32>
    %c0_20 = arith.constant 0 : index
    %c0_21 = arith.constant 0 : index
    %c0_22 = arith.constant 0 : index
    %43 = vector.load %arg4[%c0_20, %c0_21, %c0_22] : memref<1x8x256xf32, #tpu.memory_space<vmem>>, vector<1x8x256xf32>
    %44 = vector.shape_cast %43 : vector<1x8x256xf32> to vector<8x256xf32>
    %45 = vector.shape_cast %42 : vector<8x256xf32> to vector<1x8x256xf32>
    tpu.vector_store %arg4[%c0_20, %c0_21, %c0_22], %45 {strides = array<i32>} : memref<1x8x256xf32, #tpu.memory_space<vmem>>, vector<1x8x256xf32>,
    return
  }
  func.func @transform_0(%arg0: i32) -> (i32, i32, i32, i32) {
    %c0_i32 = arith.constant 0 : i32
    %c0_i32_0 = arith.constant 0 : i32
    %c0_i32_1 = arith.constant 0 : i32
    %c0_i32_2 = arith.constant 0 : i32
    return %arg0, %c0_i32, %c0_i32_0, %c0_i32_1 : i32, i32, i32, i32
  }
  func.func @transform_1(%arg0: i32) -> (i32, i32) {
    %c0_i32 = arith.constant 0 : i32
    %c0_i32_0 = arith.constant 0 : i32
    %c0_i32_1 = arith.constant 0 : i32
    return %c0_i32, %c0_i32_0 : i32, i32
  }
  func.func @transform_2(%arg0: i32) -> (i32, i32) {
    %c0_i32 = arith.constant 0 : i32
    %c0_i32_0 = arith.constant 0 : i32
    %c0_i32_1 = arith.constant 0 : i32
    return %c0_i32, %c0_i32_0 : i32, i32
  }
  func.func @transform_3(%arg0: i32) -> (i32, i32, i32) {
    %c0_i32 = arith.constant 0 : i32
    %c0_i32_0 = arith.constant 0 : i32
    %c0_i32_1 = arith.constant 0 : i32
    return %arg0, %c0_i32, %c0_i32_0 : i32, i32, i32
  }
}

</mosaic_0001>

<bundles_post_ra>
// kernel: tpu_custom_call.1
= control target key start
LH: loop header
LB: loop body
LE: loop exit
PB: predicated region body
PF: predicated region fallthrough
CT: control target
= control target key end

     0   :  { %8 = vsyncpa [#allocation4], 0  ;;  %s4646_s0 = inlined_call_operand.hbm [shape: f32[2,4,16,16], index: 0, kind: input, shape index: {}]   ;;  %s4647_s1 = inlined_call_operand.vmem [shape: f32[8,36], index: 1, kind: input, shape index: {}]   ;;  %s4648_s2 = inlined_call_operand.vmem [shape: f32[8,1], index: 2, kind: input, shape index: {}]   ;;  %s4649_s3 = inlined_call_operand.hbm [shape: f32[2,8,256], index: 3, kind: output, shape index: {}]  }
   0x1   :  { %10 = vsyncpa [#allocation4 + $0x1], 0 }
   0x2   :  { %11 = vsyncpa [#allocation5], 0 }
   0x3   :  { %13 = vsyncpa [#allocation5 + $0x1], 0  ;;  %s2913_s12 = smov 0   ;;  %s2915_s13 = smov 0  }
   0x4   :  { %s2917_s14 = smov 0   ;;  %s2919_s15 = smov 0  }
   0x5 LB: > { %s2934_s16 = sadd.s32 4294967295, %s2872_s15   ;;  %s2697_s17 = sadd.s32 4294967294, %s2872_s15   ;;  %s2872_s15 = sphi %s2919_s15, %s4809_s15   ;;  %s2868_s14 = sphi %s2917_s14, %s4808_s14   ;;  %s2864_s13 = sphi %s2915_s13, %s4807_s13   ;;  %s2860_s12 = sphi %s2913_s12, %s4806_s12  }
   0x6   : > { %s2938_s18 = sadd.s32 1, %s2872_s15   ;;  %s26_s19 = sadd.s32 1, %s2868_s14 }
   0x7   : > { %s23_s20 = ssub.s32 %s2872_s15, %s2938_s18  ;;  %p33_p0 = scmp.ne.s32.totalorder %s2868_s14, %s2864_s13 }
   0x8   : > { %p24_p1 = scmp.eq.s32.totalorder %s23_s20, 0  ;;  %p34_p2 = scmp.eq.s32.totalorder %s2872_s15, 0 }
   0x9   : > { %p39_p3 = scmp.ne.s32.totalorder %s2864_s13, %s2860_s12  ;;  %p40_p4 = scmp.eq.s32.totalorder %s2934_s16, 0 }
   0xa   : > { %s2950_s21 = scalar_select %p24_p1, %s2868_s14, %s26_s19  }
   0xb   : > { %p2952_p5 = por %p34_p2, %p33_p0  ;;  %p2956_p6 = por %p40_p4, %p39_p3 }
   0xc   : > { %p105_p7 = scmp.eq.s32.totalorder %s2934_s16, 1  ;;  %p111_p8 = scmp.eq.s32.totalorder %s2697_s17, 1 }
   0xd   : > { %s4691_s23 = scalar_select %p2956_p6, 1, 0 }
   0xe   : > { %p2728_p10 = scmp.lt.s32.totalorder %s2872_s15, 2  ;;  %p2963_p11 = por %p105_p7, %p33_p0 }
   0xf   : > { %p2967_p12 = por %p111_p8, %p39_p3  ;;  %s137_s26 = sand.u32 1, %s2868_s14  }
  0x10   : > { %s4692_s24 = scalar_select %p2963_p11, 1, 0 }
  0x11   : > { %s4693_s25 = scalar_select %p2967_p12, 1, 0 }
  0x12   : > { %s2714_s27 = sshll.u32 %s2872_s15, 10  ;;  %s2700_s28 = sshll.u32 %s137_s26, 6 }
  0x13   : > { %s2976_s4 = scalar_lea.hbm %s4646_s0, %s2714_s27  ;;  %s141_s5 = scalar_lea.vmem [#allocation3], %s2700_s28 }
  0x14   : > { %s148_s6 = sshll.u32 %s141_s5, 4  ;;  %p2980_p13 = pnand %p2728_p10, %p2952_p5  ;;  %s2984_s6 = int_to_ptr.vmem [resolvable:$true] %s148_s6 }
  0x15   : > { %s2986_s8 = scalar_lea.sflag [#allocation4], %s137_s26  ;;  %s2780_s9 = scalar_lea.hbm %s2976_s4, 1024 }
  0x16   : > { %p2781_p0 = scmp.ne.s32.totalorder %s2976_s4, %s2780_s9  ;;  %p2782_p1 = pneg %p2980_p13 }
  0x17   : > { %s2785_s17 = scalar_lea.hbm %s4646_s0, 2048  ;;  %p2786_p4 = scmp.lt.s32.totalorder %s2976_s4, %s4646_s0 }
  0x18   : > { %p2783_p2 = pnand %p2782_p1, %p2781_p0  ;;  %p2787_p5 = scmp.lt.s32.totalorder %s2785_s17, %s2780_s9 }
  0x1a   : > { %p2784_p3 = pneg %p2783_p2  ;;  %p2788_p7 = por %p2787_p5, %p2786_p4 }
  0x1c   : > { %p2789_p8 = pnand %p2788_p7, %p2784_p3 }
  0x1e   : > { %2792 = shalt.err (!%p2789_p8)
}
  0x1f   : > { %s2793_s22 = scalar_lea.vmem %s2984_s6, 1024  ;;  %s2874_s26 = smov [#allocation3]  }
  0x20   : > { %p2794_p10 = scmp.ne.s32.totalorder %s2984_s6, %s2793_s22  ;;  %s2798_s27 = sshll.u32 %s2874_s26, 4  ;;  %s2799_s27 = int_to_ptr.vmem [resolvable:$false] %s2798_s27 }
  0x21   : > { %s2800_s28 = scalar_lea.vmem %s2799_s27, 2048  ;;  %p2801_p2 = scmp.lt.s32.totalorder %s2984_s6, %s2799_s27 }
  0x22   : > { %p2796_p9 = pnand %p2794_p10, %p2782_p1  ;;  %p2802_p12 = scmp.lt.s32.totalorder %s2800_s28, %s2793_s22 }
  0x24   : > { %p2797_p0 = pneg %p2796_p9  ;;  %p2803_p11 = por %p2802_p12, %p2801_p2 }
  0x26   : > { %p2804_p6 = pnand %p2803_p11, %p2797_p0 }
  0x28   : > { %2807 = shalt.err (!%p2804_p6)
}
  0x29   : > { %s2875_s29 = smov 128   ;;  %s2876_s30 = smov 8  }
  0x2a   : > { %2723 = dma.hbm_to_vmem [thread:$0]  (!%p2980_p13), %s2976_s4, 1024, %s2984_s6, %s2986_s8, %s2875_s29, %s2875_s29, %s2876_s30  }
  0x2b   : > { %p2703_p9 = scmp.ge.s32.totalorder %s2872_s15, 1  ;;  %p156_p1 = scmp.lt.s32.totalorder %s2872_s15, 3 }
  0x2d   : > { %p157_p3 = pnand %p2703_p9, %p156_p1 }
  0x2f   : > { %160 = sbr.rel (%p157_p3) target bundleno = 1003 (0x3eb), region = 32 }
  0x34   : > { %s3010_s5 = sand.u32 1, %s2864_s13   ;;  %p4695_p6 = scmp.ne.s32.totalorder %s4691_s23, 0 }
  0x35   : > { %s2704_s9 = sshll.u32 %s3010_s5, 6  ;;  %s163_s10 = scalar_lea.sflag [#allocation4], %s3010_s5 }
  0x36   : > { %s3014_s11 = scalar_lea.vmem [#allocation3], %s2704_s9 }
  0x37   : > { %2851 = dma.done.wait (%p4695_p6), %s163_s10, 1024  }
  0x38   : > { %2853 = vsyncadd (%p4695_p6), %s163_s10, 4294966272  ;;  %v190_v0 = vld [vmem:[%s3014_s11 + $0x8] sm:$0xff]  ;;  %vm213_vm0 = vcmask 1040384   ;;  %v189_v1 = vld [vmem:[%s3014_s11] sm:$0xff]  ;;  %s2877_s23 = smov 127   ;;  %s2878_s4 = smov 1  }
  0x39   : > { %v191_v2 = vld [vmem:[%s3014_s11 + $0x10] sm:$0xff]  ;;  %v215_v3 = vrot.slane %v190_v0, 7  ;;  %v234_v4 = vrot.slane %v190_v0, 5  ;;  %v201_v5 = vrot.slane %v189_v1, 1  ;;  %v214_v6 = vrot.slane %v189_v1, 7  ;;  %v192_v9 = vld [vmem:[%s3014_s11 + $0x18] sm:$0xff] }
  0x3a   : > { %v202_v7 = vrot.slane %v191_v2, 1  ;;  %v217_v8 = vrot.slane %v191_v2, 7  ;;  %v218_v14 = vrot.slane %v192_v9, 7  ;;  %v235_v15 = vrot.slane %v192_v9, 5  ;;  %v194_v16 = vld [vmem:[%s3014_s11 + $0x28] sm:$0xff]  ;;  %v193_v17 = vld [vmem:[%s3014_s11 + $0x20] sm:$0xff] }
  0x3b   : > { %v246_v10 = vsel %vm213_vm0, %v215_v3, %v234_v4  ;;  %v242_v11 = vsel %vm213_vm0, %v201_v5, %v214_v6  ;;  %v216_v13 = vsel %vm213_vm0, %v214_v6, %v215_v3  ;;  %v221_v18 = vrot.slane %v194_v16, 7  ;;  %v196_v23 = vld [vmem:[%s3014_s11 + $0x38] sm:$0xff]  ;;  %v195_v24 = vld [vmem:[%s3014_s11 + $0x30] sm:$0xff]  ;;  %s2879_s6 = smov 3   ;;  %s2882_s7 = smov 126  }
  0x3c   : > { %262 = vrot.lane.b32.xlu1 %v246_v10, %s2877_s23  ;;  %258 = vrot.lane.b32.xlu0 %v242_v11, %s2877_s23  ;;  %v243_v12 = vsel %vm213_vm0, %v202_v7, %v217_v8  ;;  %v247_v19 = vsel %vm213_vm0, %v218_v14, %v235_v15  ;;  %v219_v20 = vsel %vm213_vm0, %v217_v8, %v218_v14  ;;  %v236_v21 = vrot.slane %v194_v16, 5  ;;  %s2884_s8 = smov 16   ;;  %s2885_s17 = smov 32  }
  0x3d   : > { %v220_v22 = vrot.slane %v193_v17, 7  ;;  %v224_v25 = vrot.slane %v196_v23, 7  ;;  %v237_v28 = vrot.slane %v196_v23, 5  ;;  %v223_v29 = vrot.slane %v195_v24, 7  ;;  %s2886_s19 = smov 48   ;;  %s2887_s20 = smov 64  }
  0x3e   : > { %v248_v26 = vsel %vm213_vm0, %v221_v18, %v236_v21  ;;  %v204_v32 = vrot.slane %v195_v24, 1  ;;  %v203_v33 = vrot.slane %v193_v17, 1  ;;  %v4652_v36 = vmov 0.0   ;;  %s2888_s22 = smov 96   ;;  %s2889_s26 = smov 80  }
  0x3f   : > { %v222_v27 = vsel %vm213_vm0, %v220_v22, %v221_v18  ;;  %v249_v30 = vsel %vm213_vm0, %v224_v25, %v237_v28  ;;  %v225_v31 = vsel %vm213_vm0, %v223_v29, %v224_v25  ;;  %2601 = vmatprep.mubr.f32.mxu0 %v4652_v36  ;;  %vm366_vm1 = vcmask 7168   ;;  %s2890_s27 = smov 112   ;;  %s2705_s10 = sshll.u32 %s3010_s5, 4 }
  0x40   : > { %264 = vrot.lane.b32.xlu1 %v243_v12, %s2877_s23  ;;  %260 = vrot.lane.b32.xlu0 %v216_v13, %s2877_s23  ;;  %v245_v34 = vsel %vm213_vm0, %v204_v32, %v223_v29  ;;  %v244_v35 = vsel %vm213_vm0, %v203_v33, %v220_v22  ;;  %vm379_vm2 = vcmask 138240   ;;  %vm1802_vm3 = vcmask 1045504   ;;  %s2715_s11 = sshll.u32 %s2934_s16, 8  ;;  %p4803_p12 = scmp.ne.s32.totalorder %s4692_s24, 0 }
  0x41   : > { %vm1089_vm4 = vcmask 1046528   ;;  %v2881_v29 = vmov 1983009808   ;;  %vm584_vm5 = vcmask 130048   ;;  %vm586_vm6 = vcmask 261120  }
  0x42   : > { %vm588_vm7 = vcmask 392192   ;;  %vm590_vm8 = vcmask 523264   ;;  %vm592_vm9 = vcmask 654336   ;;  %vm594_vm10 = vcmask 785408  }
  0x43   : > { %vm596_vm11 = vcmask 916480   ;;  %vm2530_vm12 = vcmask 1043456   ;;  %vm2526_vm13 = vcmask 293888  }
  0x44   : > { %268 = vrot.lane.b32.xlu1 %v247_v19, %s2877_s23  ;;  %266 = vrot.lane.b32.xlu0 %v219_v20, %s2877_s23 }
  0x48   : > { %274 = vrot.lane.b32.xlu1 %v248_v26, %s2877_s23  ;;  %272 = vrot.lane.b32.xlu0 %v222_v27, %s2877_s23 }
  0x4c   : > { %280 = vrot.lane.b32.xlu1 %v249_v30, %s2877_s23  ;;  %278 = vrot.lane.b32.xlu0 %v225_v31, %s2877_s23 }
  0x50   : > { %298 = vrot.lane.b32.xlu1 %v246_v10, %s2878_s4  ;;  %296 = vrot.lane.b32.xlu0 %v216_v13, %s2878_s4 }
  0x54   : > { %304 = vrot.lane.b32.xlu1 %v247_v19, %s2878_s4  ;;  %302 = vrot.lane.b32.xlu0 %v219_v20, %s2878_s4 }
  0x58   : > { %310 = vrot.lane.b32.xlu1 %v248_v26, %s2878_s4  ;;  %308 = vrot.lane.b32.xlu0 %v222_v27, %s2878_s4 }
  0x5c   : > { %316 = vrot.lane.b32.xlu1 %v249_v30, %s2878_s4  ;;  %314 = vrot.lane.b32.xlu0 %v225_v31, %s2878_s4 }
  0x60   : > { %276 = vrot.lane.b32.xlu1 %v245_v34, %s2877_s23  ;;  %270 = vrot.lane.b32.xlu0 %v244_v35, %s2877_s23 }
  0x64   : > { %300 = vrot.lane.b32.xlu1 %v243_v12, %s2878_s4  ;;  %294 = vrot.lane.b32.xlu0 %v242_v11, %s2878_s4 }
  0x68   : > { %312 = vrot.lane.b32.xlu1 %v245_v34, %s2878_s4  ;;  %306 = vrot.lane.b32.xlu0 %v244_v35, %s2878_s4 }
  0x6c   : > { %334 = vrot.lane.b32.xlu1 %v246_v10, %s2879_s6  ;;  %332 = vrot.lane.b32.xlu0 %v216_v13, %s2879_s6 }
  0x70   : > { %340 = vrot.lane.b32.xlu1 %v247_v19, %s2879_s6  ;;  %338 = vrot.lane.b32.xlu0 %v219_v20, %s2879_s6 }
  0x74   : > { %346 = vrot.lane.b32.xlu1 %v248_v26, %s2879_s6  ;;  %344 = vrot.lane.b32.xlu0 %v222_v27, %s2879_s6 }
  0x78   : > { %352 = vrot.lane.b32.xlu1 %v249_v30, %s2879_s6  ;;  %350 = vrot.lane.b32.xlu0 %v225_v31, %s2879_s6  ;;  %v395_v30 = vunpack.c.l.s4 %v2881_v29 }
  0x7c   : > { %336 = vrot.lane.b32.xlu1 %v243_v12, %s2879_s6  ;;  %330 = vrot.lane.b32.xlu0 %v242_v11, %s2879_s6 }
  0x80   : > { %348 = vrot.lane.b32.xlu1 %v245_v34, %s2879_s6  ;;  %342 = vrot.lane.b32.xlu0 %v244_v35, %s2879_s6 }
  0xae   : > { %v263_v37 = vpop.permute.xlu1 %262  ;;  %v3053_v38 = vpop.permute.xlu0 %258 }
  0xb2   : > { %v3055_v39 = vpop.permute.xlu1 %264  ;;  %v261_v40 = vpop.permute.xlu0 %260 }
  0xb6   : > { %v269_v41 = vpop.permute.xlu1 %268  ;;  %v267_v42 = vpop.permute.xlu0 %266 }
  0xba   : > { %v275_v43 = vpop.permute.xlu1 %274  ;;  %v273_v44 = vpop.permute.xlu0 %272 }
  0xbe   : > { %v281_v45 = vpop.permute.xlu1 %280  ;;  %v279_v46 = vpop.permute.xlu0 %278 }
  0xc2   : > { %v299_v47 = vpop.permute.xlu1 %298  ;;  %v297_v48 = vpop.permute.xlu0 %296 }
  0xc3   : > { %v369_v61 = vsel %vm366_vm1, %v263_v37, %v299_v47  ;;  %v368_v62 = vsel %vm366_vm1, %v261_v40, %v297_v48 }
  0xc6   : > { %v305_v49 = vpop.permute.xlu1 %304  ;;  %v303_v50 = vpop.permute.xlu0 %302 }
  0xc7   : > { %v372_v5 = vsel %vm366_vm1, %v269_v41, %v305_v49  ;;  %v371_v6 = vsel %vm366_vm1, %v267_v42, %v303_v50  ;;  %v397_v41 = vlaneseq }
  0xca   : > { %v311_v51 = vpop.permute.xlu1 %310  ;;  %v309_v52 = vpop.permute.xlu0 %308 }
  0xcb   : > { %v375_v14 = vsel %vm366_vm1, %v275_v43, %v311_v51  ;;  %v374_v15 = vsel %vm366_vm1, %v273_v44, %v309_v52 }
  0xce   : > { %v317_v53 = vpop.permute.xlu1 %316  ;;  %v315_v54 = vpop.permute.xlu0 %314 }
  0xcf   : > { %v378_v27 = vsel %vm366_vm1, %v281_v45, %v317_v53  ;;  %v377_v28 = vsel %vm366_vm1, %v279_v46, %v315_v54 }
  0xd2   : > { %v3057_v55 = vpop.permute.xlu1 %276  ;;  %v3059_v56 = vpop.permute.xlu0 %270 }
  0xd6   : > { %v3061_v57 = vpop.permute.xlu1 %300  ;;  %v295_v58 = vpop.permute.xlu0 %294 }
  0xd7   : > { %v367_v40 = vsel %vm366_vm1, %v3053_v38, %v295_v58  ;;  %v370_v53 = vsel %vm366_vm1, %v3055_v39, %v3061_v57  ;;  %v396_v57 = vunpack.c.0.s8 %v395_v30 }
  0xda   : > { %v3063_v59 = vpop.permute.xlu1 %312  ;;  %v3065_v60 = vpop.permute.xlu0 %306 }
  0xde   : > { %v335_v63 = vpop.permute.xlu1 %334  ;;  %v333_v0 = vpop.permute.xlu0 %332 }
  0xdf   : > { %v382_v1 = vsel %vm379_vm2, %v369_v61, %v335_v63  ;;  %v3071_v2 = vsel %vm379_vm2, %v368_v62, %v333_v0  ;;  %v3160_v63 = vshrl.u32 %v397_v41, 7 }
  0xe0   : > { %v1806_v3 = vrot.slane %v382_v1, 2  ;;  %v1804_v4 = vrot.slane %v3071_v2, 2  ;;  %v1093_v21 = vrot.slane %v382_v1, 1  ;;  %v1091_v24 = vrot.slane %v3071_v2, 1 }
  0xe1   : > { %v376_v1 = vsel %vm366_vm1, %v3057_v55, %v3063_v59 }
  0xe2   : > { %v341_v7 = vpop.permute.xlu1 %340  ;;  %v339_v8 = vpop.permute.xlu0 %338  ;;  %v3079_v9 = vsel %vm1802_vm3, %v1804_v4, %v1806_v3  ;;  %v3128_v43 = vsel %vm1089_vm4, %v1091_v24, %v1093_v21  ;;  %v373_v3 = vsel %vm366_vm1, %v3059_v56, %v3065_v60  ;;  %v3187_v56 = vsub.s32 %v396_v57, %v3160_v63 }
  0xe3   : > { %v3082_v10 = vsel %vm379_vm2, %v372_v5, %v341_v7  ;;  %v3085_v11 = vsel %vm379_vm2, %v371_v6, %v339_v8  ;;  %2041 = vrot.lane.b32.xlu1 %v3079_v9, %s2877_s23 }
  0xe4   : > { %v1811_v12 = vrot.slane %v3082_v10, 2  ;;  %v1809_v13 = vrot.slane %v3085_v11, 2  ;;  %v1098_v38 = vrot.slane %v3082_v10, 1  ;;  %v1096_v50 = vrot.slane %v3085_v11, 1 }
  0xe6   : > { %v347_v16 = vpop.permute.xlu1 %346  ;;  %v345_v17 = vpop.permute.xlu0 %344  ;;  %v3096_v18 = vsel %vm1802_vm3, %v1809_v13, %v1811_v12  ;;  %v3173_v8 = vsel %vm1089_vm4, %v1096_v50, %v1098_v38 }
  0xe7   : > { %v388_v19 = vsel %vm379_vm2, %v375_v14, %v347_v16  ;;  %v3100_v20 = vsel %vm379_vm2, %v374_v15, %v345_v17  ;;  %2045 = vrot.lane.b32.xlu0 %v3096_v18, %s2877_s23 }
  0xe8   : > { %v1103_v22 = vrot.slane %v388_v19, 1  ;;  %v1816_v23 = vrot.slane %v388_v19, 2  ;;  %v1814_v25 = vrot.slane %v3100_v20, 2  ;;  %v1101_v26 = vrot.slane %v3100_v20, 1 }
  0xea   : > { %v353_v31 = vpop.permute.xlu1 %352  ;;  %v351_v32 = vpop.permute.xlu0 %350  ;;  %v3114_v35 = vsel %vm1802_vm3, %v1814_v25, %v1816_v23  ;;  %v3119_v37 = vsel %vm1089_vm4, %v1101_v26, %v1103_v22 }
  0xeb   : > { %v391_v33 = vsel %vm379_vm2, %v378_v27, %v353_v31  ;;  %v3111_v34 = vsel %vm379_vm2, %v377_v28, %v351_v32  ;;  %2049 = vrot.lane.b32.xlu1 %v3114_v35, %s2877_s23  ;;  %v1899_v45 = vcombine.low %v3079_v9, %v3114_v35  ;;  %v1900_v46 = vcombine.high %v3079_v9, %v3114_v35 }
  0xec   : > { %v1821_v42 = vrot.slane %v391_v33, 2  ;;  %v1108_v44 = vrot.slane %v391_v33, 1  ;;  %v1819_v47 = vrot.slane %v3111_v34, 2  ;;  %v1187_v51 = vcombine.high %v3128_v43, %v3119_v37 }
  0xed   : > { %v1106_v52 = vrot.slane %v3111_v34, 1  ;;  %v3281_v57 = vrot.slane %v1900_v46, %v3187_v56 }
  0xee   : > { %v337_v48 = vpop.permute.xlu1 %336  ;;  %v331_v49 = vpop.permute.xlu0 %330  ;;  %v3147_v58 = vsel %vm1802_vm3, %v1819_v47, %v1821_v42 }
  0xef   : > { %v3144_v54 = vsel %vm379_vm2, %v367_v40, %v331_v49  ;;  %v3150_v61 = vsel %vm379_vm2, %v370_v53, %v337_v48  ;;  %2279 = vrot.lane.b32.xlu1 %v3079_v9, %s2882_s7  ;;  %2053 = vrot.lane.b32.xlu0 %v3147_v58, %s2877_s23  ;;  %v1915_v62 = vcombine.low %v3096_v18, %v3147_v58 }
  0xf0   : > { %4696 = vst [vmem:[#allocation9_spill] sm:$0xff] %v3144_v54  ;;  %4697 = vst [vmem:[#allocation10_spill] sm:$0xff] %v3150_v61  ;;  %v1916_v39 = vcombine.high %v3096_v18, %v3147_v58  ;;  %v3163_v0 = vsel %vm1089_vm4, %v1106_v52, %v1108_v44  ;;  %v1803_v7 = vrot.slane %v3144_v54, 2  ;;  %v1808_v14 = vrot.slane %v3150_v61, 2 }
  0xf1   : > { %v1203_v55 = vcombine.high %v3173_v8, %v3163_v0  ;;  %v1090_v15 = vrot.slane %v3144_v54, 1  ;;  %v1095_v16 = vrot.slane %v3150_v61, 1  ;;  %v3243_v44 = vrot.slane %v1899_v45, %v3187_v56  ;;  %4704 = vst [vmem:[#allocation17_spill] sm:$0xff] %v3281_v57 }
  0xf2   : > { %v349_v5 = vpop.permute.xlu1 %348  ;;  %v343_v6 = vpop.permute.xlu0 %342  ;;  %v1805_v21 = vsel %vm1802_vm3, %v1803_v7, %v1804_v4  ;;  %v3268_v53 = vrot.slane %v1187_v51, %v3187_v56 }
  0xf3   : > { %v3176_v10 = vsel %vm379_vm2, %v376_v1, %v349_v5  ;;  %v3179_v12 = vsel %vm379_vm2, %v373_v3, %v343_v6  ;;  %2287 = vrot.lane.b32.xlu1 %v3114_v35, %s2882_s7  ;;  %2283 = vrot.lane.b32.xlu0 %v3096_v18, %s2882_s7  ;;  %v1810_v18 = vsel %vm1802_vm3, %v1808_v14, %v1809_v13 }
  0xf4   : > { %4698 = vst [vmem:[#allocation11_spill] sm:$0xff] %v3176_v10  ;;  %4699 = vst [vmem:[#allocation12_spill] sm:$0xff] %v3179_v12  ;;  %v1813_v59 = vrot.slane %v3179_v12, 2  ;;  %v1818_v60 = vrot.slane %v3176_v10, 2  ;;  %v1100_v17 = vrot.slane %v3179_v12, 1  ;;  %v1105_v19 = vrot.slane %v3176_v10, 1 }
  0xf5   : > { %v3225_v32 = vsel %vm1089_vm4, %v1090_v15, %v1091_v24  ;;  %v3228_v33 = vsel %vm1089_vm4, %v1095_v16, %v1096_v50  ;;  %v3253_v48 = vrot.slane %v1203_v55, %v3187_v56  ;;  %v408_v45 = vcombine.low %v3150_v61, %v3176_v10  ;;  %4701 = vst [vmem:[#allocation14_spill] sm:$0xff] %v3268_v53 }
  0xf6   : > { %v1815_v22 = vsel %vm1802_vm3, %v1813_v59, %v1814_v25  ;;  %v1820_v23 = vsel %vm1802_vm3, %v1818_v60, %v1819_v47  ;;  %v3211_v4 = vsel %vm1089_vm4, %v1100_v17, %v1101_v26  ;;  %v3214_v13 = vsel %vm1089_vm4, %v1105_v19, %v1106_v52 }
  0xf7   : > { %2039 = vrot.lane.b32.xlu1 %v1805_v21, %s2877_s23  ;;  %v1831_v27 = vcombine.low %v1805_v21, %v1815_v22  ;;  %v1832_v28 = vcombine.high %v1805_v21, %v1815_v22  ;;  %v1847_v29 = vcombine.low %v1810_v18, %v1820_v23  ;;  %v1848_v30 = vcombine.high %v1810_v18, %v1820_v23 }
  0xf8   : > { %2291 = vrot.lane.b32.xlu0 %v3147_v58, %s2882_s7  ;;  %v3231_v26 = vrot.slane %v1915_v62, %v3187_v56  ;;  %v1119_v40 = vcombine.high %v3225_v32, %v3211_v4  ;;  %v1135_v41 = vcombine.high %v3228_v33, %v3214_v13  ;;  %4700 = vst [vmem:[#allocation13_spill] sm:$0xff] %v3253_v48  ;;  %v2883_v59 = vmov 1934713408  }
  0xf9   : > { %v3217_v25 = vrot.slane %v1831_v27, %v3187_v56  ;;  %v3220_v31 = vrot.slane %v1847_v29, %v3187_v56  ;;  %v3247_v47 = vrot.slane %v1832_v28, %v3187_v56  ;;  %v3250_v38 = vrot.slane %v1848_v30, %v3187_v56 }
  0xfa   : > { %v1931_v49 = vcombine.low %v3243_v44, %v3231_v26  ;;  %v1932_v50 = vcombine.high %v3243_v44, %v3231_v26  ;;  %v392_v52 = vcombine.low %v3144_v54, %v3179_v12  ;;  %v3272_v58 = vrot.slane %v1119_v40, %v3187_v56 }
  0xfb   : > { %2047 = vrot.lane.b32.xlu1 %v1815_v22, %s2877_s23  ;;  %v1863_v42 = vcombine.low %v3217_v25, %v3220_v31  ;;  %v1864_v24 = vcombine.high %v3217_v25, %v3220_v31  ;;  %v3275_v62 = vrot.slane %v1135_v41, %v3187_v56  ;;  %v3284_v1 = vrot.slane %v1916_v39, %v3187_v56 }
  0xfc   : > { %2043 = vrot.lane.b32.xlu0 %v1810_v18, %s2877_s23  ;;  %4702 = vst [vmem:[#allocation15_spill] sm:$0xff] %v3272_v58  ;;  %v3292_v5 = vrot.slane %v392_v52, %v3187_v56  ;;  %v3295_v6 = vrot.slane %v408_v45, %v3187_v56  ;;  %v427_v60 = vunpack.c.l.s4 %v2883_v59 }
  0xfd   : > { %4703 = vst [vmem:[#allocation16_spill] sm:$0xff] %v3275_v62  ;;  %4705 = vst [vmem:[#allocation18_spill] sm:$0xff] %v3284_v1  ;;  %v1947_v9 = vcombine.low %v3281_v57, %v3284_v1 }
  0xfe   : > { %4706 = vst [vmem:[#allocation19_spill] sm:$0xff] %v3292_v5  ;;  %4707 = vst [vmem:[#allocation20_spill] sm:$0xff] %v3295_v6  ;;  %v428_v15 = vunpack.c.0.s8 %v427_v60  ;;  %v424_v16 = vcombine.low %v3292_v5, %v3295_v6 }
  0xff   : > { %2277 = vrot.lane.b32.xlu1 %v1805_v21, %s2882_s7 }
 0x100   : > { %2051 = vrot.lane.b32.xlu0 %v1820_v23, %s2877_s23  ;;  %v3346_v17 = vsub.s32 %v428_v15, %v3160_v63  ;;  %v1202_v63 = vcombine.low %v3173_v8, %v3163_v0 }
 0x102   : > { %v3349_v19 = vrot.slane %v424_v16, %v3346_v17  ;;  %v1946_v25 = vrot.slane %v1932_v50, %v3346_v17  ;;  %v3464_v60 = vrot.slane %v1947_v9, %v3346_v17 }
 0x103   : > { %2285 = vrot.lane.b32.xlu1 %v1815_v22, %s2882_s7  ;;  %v1210_v22 = vrot.slane %v1202_v63, %v3187_v56 }
 0x104   : > { %2281 = vrot.lane.b32.xlu0 %v1810_v18, %s2882_s7  ;;  %4708 = vst [vmem:[#allocation21_spill] sm:$0xff] %v3349_v19  ;;  %v456_v21 = vcombine.high %v3349_v19, %v4652_v36  ;;  %v1186_v18 = vcombine.low %v3128_v43, %v3119_v37 }
 0x107   : > { %1566 = vrot.lane.b32.xlu1 %v3128_v43, %s2882_s7 }
 0x108   : > { %2289 = vrot.lane.b32.xlu0 %v1820_v23, %s2882_s7  ;;  %v1194_v23 = vrot.slane %v1186_v18, %v3187_v56 }
 0x10a   : > { %v1219_v45 = vcombine.high %v1194_v23, %v1210_v22 }
 0x10b   : > { %1574 = vrot.lane.b32.xlu1 %v3119_v37, %s2882_s7 }
 0x10c   : > { %1570 = vrot.lane.b32.xlu0 %v3173_v8, %s2882_s7  ;;  %v3450_v44 = vrot.slane %v1219_v45, %v3346_v17 }
 0x10f   : > { %1564 = vrot.lane.b32.xlu1 %v3225_v32, %s2882_s7 }
 0x110   : > { %1578 = vrot.lane.b32.xlu0 %v3163_v0, %s2882_s7 }
 0x113   : > { %1572 = vrot.lane.b32.xlu1 %v3211_v4, %s2882_s7 }
 0x114   : > { %1568 = vrot.lane.b32.xlu0 %v3228_v33, %s2882_s7 }
 0x117   : > { %1334 = vrot.lane.b32.xlu1 %v3128_v43, %s2877_s23  ;;  %v3394_v43 = vrot.slane %v1863_v42, %v3346_v17 }
 0x118   : > { %1576 = vrot.lane.b32.xlu0 %v3214_v13, %s2882_s7 }
 0x119   : > { %4709 = vst [vmem:[#allocation22_spill] sm:$0xff] %v3394_v43  ;;  %v1895_v29 = vcombine.high %v3394_v43, %v4652_v36 }
 0x11b   : > { %1342 = vrot.lane.b32.xlu1 %v3119_v37, %s2877_s23  ;;  %v1134_v37 = vcombine.low %v3228_v33, %v3214_v13 }
 0x11c   : > { %1338 = vrot.lane.b32.xlu0 %v3173_v8, %s2877_s23  ;;  %v1218_v8 = vcombine.low %v1194_v23, %v1210_v22 }
 0x11d   : > { %v1142_v28 = vrot.slane %v1134_v37, %v3187_v56 }
 0x11e   : > { %v3405_v30 = vrot.slane %v1218_v8, %v3346_v17 }
 0x11f   : > { %1332 = vrot.lane.b32.xlu1 %v3225_v32, %s2877_s23 }
 0x120   : > { %1346 = vrot.lane.b32.xlu0 %v3163_v0, %s2877_s23  ;;  %v1118_v0 = vcombine.low %v3225_v32, %v3211_v4  ;;  %4710 = vst [vmem:[#allocation23_spill] sm:$0xff] %v3405_v30  ;;  %v3416_v32 = vrot.slane %v1931_v49, %v3346_v17  ;;  %v1964_v49 = vcombine.high %v1946_v25, %v4652_v36 }
 0x122   : > { %v1126_v27 = vrot.slane %v1118_v0, %v3187_v56  ;;  %4711 = vst [vmem:[#allocation24_spill] sm:$0xff] %v3416_v32  ;;  %v1963_v41 = vcombine.high %v3416_v32, %v4652_v36 }
 0x123   : > { %1340 = vrot.lane.b32.xlu1 %v3211_v4, %s2877_s23  ;;  %v1250_v4 = vcombine.high %v3405_v30, %v4652_v36 }
 0x124   : > { %1336 = vrot.lane.b32.xlu0 %v3228_v33, %s2877_s23  ;;  %v1878_v33 = vrot.slane %v1864_v24, %v3346_v17  ;;  %v1151_v24 = vcombine.high %v1126_v27, %v1142_v28 }
 0x126   : > { %v1896_v31 = vcombine.high %v1878_v33, %v4652_v36  ;;  %v3447_v26 = vrot.slane %v1151_v24, %v3346_v17 }
 0x127   : > { %617 = vrot.lane.b32.xlu1 %v3071_v2, %s2877_s23 }
 0x128   : > { %1344 = vrot.lane.b32.xlu0 %v3214_v13, %s2877_s23  ;;  %v1150_v13 = vcombine.low %v1126_v27, %v1142_v28 }
 0x12a   : > { %v3426_v40 = vrot.slane %v1150_v13, %v3346_v17 }
 0x12b   : > { %625 = vrot.lane.b32.xlu1 %v3100_v20, %s2877_s23 }
 0x12c   : > { %529 = vrot.lane.b32.xlu0 %v456_v21, %s2884_s8  ;;  %4712 = vst [vmem:[#allocation25_spill] sm:$0xff] %v3426_v40  ;;  %v1182_v42 = vcombine.high %v3426_v40, %v4652_v36 }
 0x12f   : > { %855 = vrot.lane.b32.xlu1 %v3071_v2, %s2882_s7 }
 0x130   : > { %621 = vrot.lane.b32.xlu0 %v3085_v11, %s2877_s23 }
 0x133   : > { %863 = vrot.lane.b32.xlu1 %v3100_v20, %s2882_s7 }
 0x134   : > { %629 = vrot.lane.b32.xlu0 %v3111_v34, %s2877_s23 }
 0x137   : > { %615 = vrot.lane.b32.xlu1 %v3144_v54, %s2877_s23 }
 0x138   : > { %859 = vrot.lane.b32.xlu0 %v3085_v11, %s2882_s7 }
 0x13b   : > { %623 = vrot.lane.b32.xlu1 %v3179_v12, %s2877_s23 }
 0x13c   : > { %867 = vrot.lane.b32.xlu0 %v3111_v34, %s2882_s7 }
 0x13f   : > { %853 = vrot.lane.b32.xlu1 %v3144_v54, %s2882_s7 }
 0x140   : > { %619 = vrot.lane.b32.xlu0 %v3150_v61, %s2877_s23 }
 0x143   : > { %861 = vrot.lane.b32.xlu1 %v3179_v12, %s2882_s7 }
 0x144   : > { %627 = vrot.lane.b32.xlu0 %v3176_v10, %s2877_s23  ;;  %s188_s23 = scalar_lea.vmem [#allocation6], %s2705_s10 }
 0x145   : > { %s2627_s4 = sshll.u32 %s188_s23, 4  ;;  %s2628_s4 = int_to_ptr.vmem [resolvable:$true] %s2627_s4 }
 0x147   : > { %1968 = vrot.lane.b32.xlu1 %v1895_v29, %s2884_s8 }
 0x148   : > { %857 = vrot.lane.b32.xlu0 %v3150_v61, %s2882_s7 }
 0x14b   : > { %1283 = vrot.lane.b32.xlu1 %v1250_v4, %s2884_s8 }
 0x14c   : > { %865 = vrot.lane.b32.xlu0 %v3176_v10, %s2882_s7 }
 0x14f   : > { %1972 = vrot.lane.b32.xlu1 %v1878_v33, %s2885_s17 }
 0x150   : > { %1996 = vrot.lane.b32.xlu0 %v1963_v41, %s2884_s8 }
 0x153   : > { %1255 = vrot.lane.b32.xlu1 %v1182_v42, %s2884_s8 }
 0x154   : > { %2000 = vrot.lane.b32.xlu0 %v1946_v25, %s2885_s17 }
 0x155   : > { %v3444_v52 = vpop.permute.xlu1 %2041 }
 0x157   : > { %1976 = vrot.lane.b32.xlu1 %v1896_v31, %s2886_s19 }
 0x158   : > { %2004 = vrot.lane.b32.xlu0 %v1964_v49, %s2886_s19 }
 0x159   : > { %v3456_v50 = vpop.permute.xlu0 %2045 }
 0x15b   : > { %1259 = vrot.lane.b32.xlu1 %v3447_v26, %s2885_s17 }
 0x15c   : > { %1287 = vrot.lane.b32.xlu0 %v3450_v44, %s2885_s17 }
 0x15d   : > { %v3458_v59 = vpop.permute.xlu1 %2049 }
 0x160   : > { %2008 = vrot.lane.b32.xlu0 %v3464_v60, %s2887_s20 }
 0x161   : > { %v3468_v15 = vpop.permute.xlu1 %2279  ;;  %v3470_v16 = vpop.permute.xlu0 %2053 }
 0x165   : > { %v3472_v21 = vpop.permute.xlu1 %2287  ;;  %v3474_v63 = vpop.permute.xlu0 %2283 }
 0x169   : > { %v3476_v18 = vpop.permute.xlu1 %2039 }
 0x16a   : > { %v3478_v22 = vpop.permute.xlu0 %2291 }
 0x16d   : > { %v2048_v23 = vpop.permute.xlu1 %2047 }
 0x16e   : > { %v2044_v0 = vpop.permute.xlu0 %2043  ;;  %v2064_v9 = vcombine.high %v3476_v18, %v2048_v23  ;;  %v2063_v1 = vcombine.low %v3476_v18, %v2048_v23 }
 0x170   : > { %v3484_v28 = vrot.slane %v2064_v9, %v3187_v56 }
 0x171   : > { %v3481_v37 = vpop.permute.xlu1 %2277 }
 0x172   : > { %v2052_v8 = vpop.permute.xlu0 %2051 }
 0x173   : > { %v2080_v27 = vcombine.high %v2044_v0, %v2052_v8  ;;  %v2079_v5 = vcombine.low %v2044_v0, %v2052_v8 }
 0x175   : > { %v3487_v29 = vrot.slane %v2080_v27, %v3187_v56  ;;  %v3489_v4 = vpop.permute.xlu1 %2285  ;;  %v3574_v48 = vrot.slane %v2079_v5, %v3187_v56 }
 0x176   : > { %v2282_v13 = vpop.permute.xlu0 %2281  ;;  %v2302_v41 = vcombine.high %v3481_v37, %v3489_v4 }
 0x178   : > { %v3498_v24 = vrot.slane %v2302_v41, %v3187_v56 }
 0x179   : > { %v3495_v42 = vpop.permute.xlu1 %1566 }
 0x17a   : > { %v2290_v25 = vpop.permute.xlu0 %2289 }
 0x17b   : > { %v2318_v31 = vcombine.high %v2282_v13, %v2290_v25  ;;  %v2317_v0 = vcombine.low %v2282_v13, %v2290_v25  ;;  %v2147_v13 = vcombine.low %v3456_v50, %v3470_v16 }
 0x17d   : > { %v3501_v49 = vrot.slane %v2318_v31, %v3187_v56  ;;  %v3503_v45 = vpop.permute.xlu1 %1574 }
 0x17e   : > { %v3505_v9 = vpop.permute.xlu0 %1570  ;;  %v1657_v55 = vcombine.high %v3495_v42, %v3503_v45 }
 0x180   : > { %v3518_v31 = vrot.slane %v1657_v55, %v3187_v56 }
 0x181   : > { %v3511_v14 = vpop.permute.xlu1 %1564 }
 0x182   : > { %v3513_v7 = vpop.permute.xlu0 %1578 }
 0x183   : > { %v1673_v41 = vcombine.high %v3505_v9, %v3513_v7 }
 0x185   : > { %v3521_v39 = vrot.slane %v1673_v41, %v3187_v56  ;;  %v1573_v46 = vpop.permute.xlu1 %1572 }
 0x186   : > { %v1569_v35 = vpop.permute.xlu0 %1568  ;;  %v1589_v27 = vcombine.high %v3511_v14, %v1573_v46 }
 0x188   : > { %v3529_v19 = vrot.slane %v1589_v27, %v3187_v56 }
 0x189   : > { %v3526_v33 = vpop.permute.xlu1 %1334 }
 0x18a   : > { %v1577_v51 = vpop.permute.xlu0 %1576 }
 0x18b   : > { %v1605_v36 = vcombine.high %v1569_v35, %v1577_v51  ;;  %v1604_v18 = vcombine.low %v1569_v35, %v1577_v51  ;;  %v2155_v51 = vrot.slane %v2147_v13, %v3187_v56  ;;  %v2385_v35 = vcombine.low %v3474_v63, %v3478_v22 }
 0x18c   : > { %v2369_v13 = vcombine.low %v3468_v15, %v3472_v21 }
 0x18d   : > { %v3532_v55 = vrot.slane %v1605_v36, %v3187_v56  ;;  %v3534_v40 = vpop.permute.xlu1 %1342 }
 0x18e   : > { %v3536_v41 = vpop.permute.xlu0 %1338 }
 0x191   : > { %v3540_v3 = vpop.permute.xlu1 %1332 }
 0x192   : > { %v3542_v32 = vpop.permute.xlu0 %1346 }
 0x195   : > { %v3544_v30 = vpop.permute.xlu1 %1340 }
 0x196   : > { %v3546_v54 = vpop.permute.xlu0 %1336 }
 0x199   : > { %v3548_v27 = vpop.permute.xlu1 %617 }
 0x19a   : > { %4713 = vst [vmem:[#allocation26_spill] sm:$0xff] %v3548_v27  ;;  %v3550_v12 = vpop.permute.xlu0 %1344 }
 0x19d   : > { %v3552_v36 = vpop.permute.xlu1 %625 }
 0x19e   : > { %4714 = vst [vmem:[#allocation27_spill] sm:$0xff] %v3552_v36  ;;  %v3554_v61 = vpop.permute.xlu0 %529  ;;  %v707_v43 = vcombine.low %v3548_v27, %v3552_v36 }
 0x19f   : > { %4715 = vst [vmem:[#allocation28_spill] sm:$0xff] %v3554_v61 }
 0x1a0   : > { %v3568_v57 = vrot.slane %v707_v43, %v3187_v56  ;;  %v3585_v43 = vrot.slane %v2063_v1, %v3187_v56  ;;  %v3601_v1 = vrot.slane %v2317_v0, %v3187_v56 }
 0x1a1   : > { %v3558_v6 = vpop.permute.xlu1 %855 }
 0x1a2   : > { %v3556_v10 = vpop.permute.xlu0 %621  ;;  %4717 = vst [vmem:[#allocation30_spill] sm:$0xff] %v3558_v6  ;;  %v2096_v25 = vcombine.high %v3585_v43, %v3574_v48 }
 0x1a3   : > { %4716 = vst [vmem:[#allocation29_spill] sm:$0xff] %v3556_v10 }
 0x1a5   : > { %v3576_v53 = vpop.permute.xlu1 %863 }
 0x1a6   : > { %v3562_v62 = vpop.permute.xlu0 %629  ;;  %4719 = vst [vmem:[#allocation32_spill] sm:$0xff] %v3576_v53  ;;  %v945_v5 = vcombine.low %v3558_v6, %v3576_v53 }
 0x1a7   : > { %4718 = vst [vmem:[#allocation31_spill] sm:$0xff] %v3562_v62  ;;  %v723_v58 = vcombine.low %v3556_v10, %v3562_v62  ;;  %v1588_v10 = vcombine.low %v3511_v14, %v1573_v46  ;;  %v3629_v46 = vrot.slane %v1604_v18, %v3187_v56 }
 0x1a8   : > { %v3614_v62 = vrot.slane %v945_v5, %v3187_v56 }
 0x1a9   : > { %v3571_v61 = vrot.slane %v723_v58, %v3187_v56  ;;  %v2301_v58 = vcombine.low %v3481_v37, %v3489_v4  ;;  %v4723_v4 = vmov 0.0  }
 0x1aa   : > { %v3578_v27 = vpop.permute.xlu0 %859 }
 0x1ab   : > { %4720 = vst [vmem:[#allocation33_spill] sm:$0xff] %v3578_v27  ;;  %v739_v8 = vcombine.low %v3568_v57, %v3571_v61  ;;  %v3610_v53 = vrot.slane %v2301_v58, %v3187_v56 }
 0x1ad   : > { %v3592_v23 = vrot.slane %v739_v8, %v3346_v17  ;;  %v2131_v8 = vcombine.low %v3444_v52, %v3458_v59  ;;  %v2334_v58 = vcombine.high %v3610_v53, %v3601_v1 }
 0x1ae   : > { %v3598_v36 = vpop.permute.xlu0 %867 }
 0x1af   : > { %4721 = vst [vmem:[#allocation34_spill] sm:$0xff] %v3592_v23  ;;  %4722 = vst [vmem:[#allocation35_spill] sm:$0xff] %v3598_v36  ;;  %v961_v37 = vcombine.low %v3578_v27, %v3598_v36  ;;  %v771_v6 = vcombine.high %v3592_v23, %v4723_v4  ;;  %v3624_v23 = vrot.slane %v2096_v25, %v3346_v17 }
 0x1b0   : > { %v2139_v5 = vrot.slane %v2131_v8, %v3187_v56  ;;  %v3639_v25 = vrot.slane %v1588_v10, %v3187_v56  ;;  %v3647_v27 = vrot.slane %v2385_v35, %v3187_v56  ;;  %v3654_v36 = vrot.slane %v2334_v58, %v3346_v17 }
 0x1b1   : > { %v3617_v0 = vrot.slane %v961_v37, %v3187_v56  ;;  %804 = vrot.lane.b32.xlu1 %v771_v6, %s2884_s8  ;;  %v1672_v6 = vcombine.low %v3505_v9, %v3513_v7  ;;  %v2148_v7 = vcombine.high %v3456_v50, %v3470_v16  ;;  %v2111_v58 = vcombine.low %v3484_v28, %v3487_v29 }
 0x1b2   : > { %v2164_v37 = vcombine.high %v2139_v5, %v2155_v51  ;;  %v1621_v8 = vcombine.high %v3639_v25, %v3629_v46  ;;  %v2163_v16 = vcombine.low %v2139_v5, %v2155_v51  ;;  %v2095_v5 = vcombine.low %v3585_v43, %v3574_v48 }
 0x1b3   : > { %4724 = vst [vmem:[#allocation36_spill] sm:$0xff] %v3617_v0  ;;  %v977_v14 = vcombine.low %v3614_v62, %v3617_v0  ;;  %v3659_v0 = vrot.slane %v2369_v13, %v3187_v56  ;;  %v1680_v13 = vrot.slane %v1672_v6, %v3187_v56  ;;  %v2162_v50 = vrot.slane %v2148_v7, %v3187_v56 }
 0x1b4   : > { %v3669_v9 = vrot.slane %v2164_v37, %v3346_v17  ;;  %v2386_v6 = vcombine.high %v3474_v63, %v3478_v22  ;;  %v2349_v37 = vcombine.low %v3498_v24, %v3501_v49  ;;  %v3706_v51 = vrot.slane %v2163_v16, %v3346_v17 }
 0x1b5   : > { %2204 = vrot.lane.b32.xlu1 %v3624_v23, %s2885_s17  ;;  %v3644_v18 = vrot.slane %v977_v14, %v3346_v17  ;;  %v1656_v14 = vcombine.low %v3495_v42, %v3503_v45  ;;  %v2402_v35 = vcombine.high %v3659_v0, %v3647_v27  ;;  %v3677_v42 = vrot.slane %v1621_v8, %v3346_v17 }
 0x1b6   : > { %v2132_v45 = vcombine.high %v3444_v52, %v3458_v59  ;;  %v3692_v52 = vrot.slane %v2111_v58, %v3346_v17  ;;  %v2400_v22 = vrot.slane %v2386_v6, %v3187_v56  ;;  %v1440_v7 = vcombine.low %v3536_v41, %v3542_v32 }
 0x1b7   : > { %4725 = vst [vmem:[#allocation37_spill] sm:$0xff] %v3644_v18  ;;  %v1009_v10 = vcombine.high %v3644_v18, %v4723_v4  ;;  %v3695_v59 = vrot.slane %v2402_v35, %v3346_v17  ;;  %v2370_v18 = vcombine.high %v3468_v15, %v3472_v21  ;;  %v3713_v15 = vrot.slane %v2349_v37, %v3346_v17 }
 0x1b8   : > { %v1424_v58 = vcombine.low %v3526_v33, %v3534_v40  ;;  %v2333_v48 = vcombine.low %v3610_v53, %v3601_v1  ;;  %v1448_v16 = vrot.slane %v1440_v7, %v3187_v56  ;;  %v3734_v6 = vrot.slane %v2095_v5, %v3346_v17 }
 0x1b9   : > { %2442 = vrot.lane.b32.xlu1 %v3654_v36, %s2885_s17  ;;  %1042 = vrot.lane.b32.xlu0 %v1009_v10, %s2884_s8  ;;  %v1664_v10 = vrot.slane %v1656_v14, %v3187_v56  ;;  %v2146_v14 = vrot.slane %v2132_v45, %v3187_v56  ;;  %v2384_v35 = vrot.slane %v2370_v18, %v3187_v56 }
 0x1ba   : > { %v2195_v18 = vcombine.high %v3706_v51, %v4723_v4  ;;  %4726 = vst [vmem:[#allocation38_spill] sm:$0xff] %v3734_v6  ;;  %v1432_v37 = vrot.slane %v1424_v58, %v3187_v56  ;;  %v3741_v53 = vrot.slane %v2333_v48, %v3346_v17  ;;  %v1704_v58 = vcombine.low %v3518_v31, %v3521_v39 }
 0x1bb   : > { %v1689_v8 = vcombine.high %v1664_v10, %v1680_v13  ;;  %v2179_v63 = vcombine.low %v2146_v14, %v2162_v50  ;;  %v2417_v45 = vcombine.low %v2384_v35, %v2400_v22  ;;  %v1688_v1 = vcombine.low %v1664_v10, %v1680_v13 }
 0x1bc   : > { %v2365_v5 = vcombine.high %v3741_v53, %v4723_v4  ;;  %v1620_v13 = vcombine.low %v3639_v25, %v3629_v46  ;;  %v3771_v46 = vrot.slane %v1704_v58, %v3346_v17 }
 0x1bd   : > { %1729 = vrot.lane.b32.xlu1 %v3677_v42, %s2885_s17  ;;  %2232 = vrot.lane.b32.xlu0 %v3669_v9, %s2885_s17  ;;  %v3716_v21 = vrot.slane %v1689_v8, %v3346_v17  ;;  %v3728_v43 = vrot.slane %v2179_v63, %v3346_v17  ;;  %v1457_v8 = vcombine.high %v1432_v37, %v1448_v16 }
 0x1be   : > { %v2127_v63 = vcombine.high %v3734_v6, %v4723_v4  ;;  %v3746_v7 = vrot.slane %v2417_v45, %v3346_v17  ;;  %v3761_v48 = vrot.slane %v1688_v1, %v3346_v17  ;;  %v2180_v45 = vcombine.high %v2146_v14, %v2162_v50 }
 0x1bf   : > { %v3758_v10 = vrot.slane %v1457_v8, %v3346_v17  ;;  %v3774_v25 = vrot.slane %v1620_v13, %v3346_v17  ;;  %v1356_v1 = vcombine.low %v3540_v3, %v3544_v30  ;;  %v2401_v14 = vcombine.low %v3659_v0, %v3647_v27 }
 0x1c0   : > { %v3782_v50 = vrot.slane %v2180_v45, %v3346_v17  ;;  %v2418_v8 = vcombine.high %v2384_v35, %v2400_v22  ;;  %v2128_v45 = vcombine.high %v3624_v23, %v4723_v4  ;;  %v2366_v22 = vcombine.high %v3654_v36, %v4723_v4  ;;  %v3819_v36 = vpop.permute.xlu0 %619 }
 0x1c1   : > { %2212 = vrot.lane.b32.xlu1 %v3692_v52, %s2887_s20  ;;  %2470 = vrot.lane.b32.xlu0 %v3695_v59, %s2885_s17  ;;  %v1652_v58 = vcombine.high %v3774_v25, %v4723_v4  ;;  %v1364_v13 = vrot.slane %v1356_v1, %v3187_v56  ;;  %v3799_v0 = vrot.slane %v2401_v14, %v3346_v17 }
 0x1c2   : > { %v3796_v27 = vrot.slane %v2418_v8, %v3346_v17  ;;  %v1456_v23 = vcombine.low %v1432_v37, %v1448_v16  ;;  %v2196_v14 = vcombine.high %v3669_v9, %v4723_v4  ;;  %v1653_v8 = vcombine.high %v3677_v42, %v4723_v4  ;;  %v3828_v37 = vpop.permute.xlu1 %615 }
 0x1c3   : > { %v2433_v35 = vcombine.high %v3799_v0, %v4723_v4  ;;  %v2129_v9 = vcombine.high %v3692_v52, %v4723_v4 }
 0x1c4   : > { %v3826_v16 = vrot.slane %v1456_v23, %v3346_v17  ;;  %v1636_v23 = vcombine.low %v3529_v19, %v3532_v55 }
 0x1c5   : > { %2450 = vrot.lane.b32.xlu1 %v3713_v15, %s2887_s20  ;;  %1757 = vrot.lane.b32.xlu0 %v3716_v21, %s2885_s17 }
 0x1c6   : > { %v3840_v42 = vpop.permute.xlu1 %623 }
 0x1c9   : > { %2228 = vrot.lane.b32.xlu1 %v2195_v18, %s2884_s8  ;;  %2240 = vrot.lane.b32.xlu0 %v3728_v43, %s2887_s20  ;;  %v1372_v18 = vcombine.low %v3546_v54, %v3550_v12 }
 0x1cd   : > { %2200 = vrot.lane.b32.xlu1 %v2127_v63, %s2884_s8  ;;  %2478 = vrot.lane.b32.xlu0 %v3746_v7, %s2887_s20  ;;  %v1720_v63 = vcombine.high %v3761_v48, %v4723_v4 }
 0x1d1   : > { %2438 = vrot.lane.b32.xlu1 %v2365_v5, %s2884_s8  ;;  %1525 = vrot.lane.b32.xlu0 %v3758_v10, %s2885_s17  ;;  %v1380_v5 = vrot.slane %v1372_v18, %v3187_v56 }
 0x1d5   : > { %1753 = vrot.lane.b32.xlu1 %v1720_v63, %s2884_s8  ;;  %1765 = vrot.lane.b32.xlu0 %v3771_v46, %s2887_s20  ;;  %v1388_v63 = vcombine.low %v1364_v13, %v1380_v5 }
 0x1d7   : > { %v3809_v18 = vrot.slane %v1388_v63, %v3346_v17  ;;  %v1488_v63 = vcombine.high %v3826_v16, %v4723_v4 }
 0x1d9   : > { %1725 = vrot.lane.b32.xlu1 %v1652_v58, %s2884_s8  ;;  %2248 = vrot.lane.b32.xlu0 %v3782_v50, %s2888_s22  ;;  %v1420_v1 = vcombine.high %v3809_v18, %v4723_v4  ;;  %v2434_v58 = vcombine.high %v3695_v59, %v4723_v4  ;;  %v1389_v59 = vcombine.high %v1364_v13, %v1380_v5  ;;  %v3855_v13 = vpop.permute.xlu1 %853 }
 0x1da   : > { %v2197_v5 = vcombine.high %v3728_v43, %v4723_v4 }
 0x1dd   : > { %2208 = vrot.lane.b32.xlu1 %v2128_v45, %s2886_s19  ;;  %2486 = vrot.lane.b32.xlu0 %v3796_v27, %s2888_s22  ;;  %v3836_v45 = vpop.permute.xlu0 %627  ;;  %v3870_v43 = vpop.permute.xlu1 %861 }
 0x1e1   : > { %2446 = vrot.lane.b32.xlu1 %v2366_v22, %s2886_s19  ;;  %2466 = vrot.lane.b32.xlu0 %v2433_v35, %s2884_s8  ;;  %v2367_v22 = vcombine.high %v3713_v15, %v4723_v4  ;;  %v1721_v35 = vcombine.high %v3716_v21, %v4723_v4  ;;  %v3848_v52 = vpop.permute.xlu0 %857  ;;  %v655_v15 = vcombine.low %v3819_v36, %v3836_v45  ;;  %v3904_v6 = vpop.permute.xlu1 %1968 }
 0x1e2   : > { %v1644_v21 = vrot.slane %v1636_v23, %v3346_v17  ;;  %v877_v23 = vcombine.low %v3855_v13, %v3870_v43  ;;  %4729 = vst [vmem:[#allocation39_spill] sm:$0xff] %v3904_v6 }
 0x1e5   : > { %1493 = vrot.lane.b32.xlu1 %v1420_v1, %s2884_s8  ;;  %2236 = vrot.lane.b32.xlu0 %v2196_v14, %s2886_s19  ;;  %v1403_v1 = vrot.slane %v1389_v59, %v3346_v17  ;;  %v2435_v14 = vcombine.high %v3746_v7, %v4723_v4  ;;  %v4727_v59 = vcombine.low %v3247_v47, %v3250_v38 }
 0x1e9   : > { %1733 = vrot.lane.b32.xlu1 %v1653_v8, %s2886_s19  ;;  %2474 = vrot.lane.b32.xlu0 %v2434_v58, %s2886_s19  ;;  %v3864_v8 = vpop.permute.xlu0 %865  ;;  %v639_v58 = vcombine.low %v3828_v37, %v3840_v42 }
 0x1ea   : > { %v893_v7 = vcombine.low %v3848_v52, %v3864_v8 }
 0x1ed   : > { %2216 = vrot.lane.b32.xlu1 %v2129_v9, %s2889_s26  ;;  %1521 = vrot.lane.b32.xlu0 %v1488_v63, %s2884_s8  ;;  %v1251_v9 = vcombine.high %v3450_v44, %v4723_v4  ;;  %v3875_v63 = vrot.slane %v655_v15, %v3187_v56  ;;  %v4728_v15 = vcombine.high %v3484_v28, %v3487_v29 }
 0x1ee   : > { %v4730_v28 = vcombine.high %v3498_v24, %v3501_v49 }
 0x1f0   : > { %v3914_v29 = vrot.slane %v4730_v28, %v3346_v17  ;;  %v2436_v28 = vcombine.high %v3796_v27, %v4723_v4  ;;  %v460_v27 = vcombine.low %v3071_v2, %v3100_v20 }
 0x1f1   : > { %2454 = vrot.lane.b32.xlu1 %v2367_v22, %s2889_s26  ;;  %1761 = vrot.lane.b32.xlu0 %v1721_v35, %s2886_s19  ;;  %v1887_v22 = vrot.slane %v4727_v59, %v3346_v17  ;;  %v3884_v35 = vrot.slane %v639_v58, %v3187_v56  ;;  %v1489_v58 = vcombine.high %v3758_v10, %v4723_v4 }
 0x1f2   : > { %v3902_v59 = vrot.slane %v877_v23, %v3187_v56  ;;  %v1722_v10 = vcombine.high %v3771_v46, %v4723_v4  ;;  %v1965_v23 = vcombine.high %v3464_v60, %v4723_v4  ;;  %v2198_v46 = vcombine.high %v3782_v50, %v4723_v4 }
 0x1f3   : > { %v671_v44 = vcombine.low %v3884_v35, %v3875_v63  ;;  %v1183_v60 = vcombine.high %v3447_v26, %v4723_v4  ;;  %v476_v50 = vcombine.low %v3085_v11, %v3111_v34  ;;  %v4736_v26 = vcombine.high %v3568_v57, %v3571_v61  ;;  %v4738_v57 = vld [vmem:[#allocation36_spill] sm:$0xff] }
 0x1f5   : > { %1497 = vrot.lane.b32.xlu1 %v1403_v1, %s2885_s17  ;;  %2244 = vrot.lane.b32.xlu0 %v2197_v5, %s2889_s26  ;;  %v3893_v5 = vrot.slane %v893_v7, %v3187_v56  ;;  %v3919_v7 = vrot.slane %v671_v44, %v3346_v17 }
 0x1f7   : > { %4731 = vst [vmem:[#allocation40_spill] sm:$0xff] %v3919_v7  ;;  %v703_v24 = vcombine.high %v3919_v7, %v4723_v4 }
 0x1f9   : > { %1737 = vrot.lane.b32.xlu1 %v1644_v21, %s2887_s20  ;;  %2482 = vrot.lane.b32.xlu0 %v2435_v14, %s2889_s26  ;;  %v2126_v14 = vrot.slane %v4728_v15, %v3346_v17  ;;  %v3926_v15 = vpop.permute.xlu1 %1283 }
 0x1fd   : > { %1980 = vrot.lane.b32.xlu1 %v1887_v22, %s2887_s20  ;;  %1291 = vrot.lane.b32.xlu0 %v1251_v9, %s2886_s19  ;;  %v909_v9 = vcombine.low %v3902_v59, %v3893_v5 }
 0x1ff   : > { %v3931_v49 = vrot.slane %v909_v9, %v3346_v17  ;;  %v3945_v9 = vpop.permute.xlu0 %1996 }
 0x200   : > { %4734 = vst [vmem:[#allocation43_spill] sm:$0xff] %v3945_v9 }
 0x201   : > { %2220 = vrot.lane.b32.xlu1 %v2126_v14, %s2888_s22  ;;  %1529 = vrot.lane.b32.xlu0 %v1489_v58, %s2886_s19  ;;  %4732 = vst [vmem:[#allocation41_spill] sm:$0xff] %v3931_v49  ;;  %v941_v44 = vcombine.high %v3931_v49, %v4723_v4  ;;  %v3939_v58 = vpop.permute.xlu1 %1972 }
 0x202   : > { %4733 = vst [vmem:[#allocation42_spill] sm:$0xff] %v3939_v58 }
 0x205   : > { %2458 = vrot.lane.b32.xlu1 %v3914_v29, %s2888_s22  ;;  %1769 = vrot.lane.b32.xlu0 %v1722_v10, %s2889_s26  ;;  %v1441_v10 = vcombine.high %v3536_v41, %v3542_v32  ;;  %v3971_v32 = vrot.slane %v476_v50, %v3187_v56  ;;  %v4739_v41 = vcombine.high %v3614_v62, %v4738_v57  ;;  %v4742_v62 = vld [vmem:[#allocation14_spill] sm:$0xff] }
 0x206   : > { %v1897_v57 = vcombine.high %v1887_v22, %v4723_v4 }
 0x207   : > { %v3974_v61 = vrot.slane %v1441_v10, %v3187_v56 }
 0x209   : > { %2012 = vrot.lane.b32.xlu0 %v1965_v23, %s2889_s26  ;;  %776 = vrot.lane.b32.xlu1 %v703_v24, %s2884_s8  ;;  %v3955_v23 = vpop.permute.xlu1 %1255  ;;  %v754_v24 = vrot.slane %v4736_v26, %v3346_v17 }
 0x20a   : > { %4735 = vst [vmem:[#allocation44_spill] sm:$0xff] %v3955_v23  ;;  %v2130_v23 = vcombine.high %v2126_v14, %v4723_v4 }
 0x20d   : > { %2252 = vrot.lane.b32.xlu0 %v2198_v46, %s2890_s27  ;;  %1014 = vrot.lane.b32.xlu1 %v941_v44, %s2884_s8  ;;  %v1421_v46 = vcombine.high %v1403_v1, %v4723_v4  ;;  %v1425_v44 = vcombine.high %v3526_v33, %v3534_v40  ;;  %v992_v1 = vrot.slane %v4739_v41, %v3346_v17  ;;  %v3987_v26 = vpop.permute.xlu1 %1976 }
 0x20e   : > { %v3982_v40 = vrot.slane %v460_v27, %v3187_v56  ;;  %4740 = vst [vmem:[#allocation36_spill] sm:$0xff] %v3987_v26 }
 0x20f   : > { %v3985_v33 = vrot.slane %v1425_v44, %v3187_v56 }
 0x210   : > { %v492_v44 = vcombine.low %v3982_v40, %v3971_v32 }
 0x211   : > { %2490 = vrot.lane.b32.xlu0 %v2436_v28, %s2890_s27  ;;  %1263 = vrot.lane.b32.xlu1 %v1183_v60, %s2886_s19  ;;  %v3966_v60 = vpop.permute.xlu0 %2000  ;;  %v1654_v28 = vcombine.high %v1644_v21, %v4723_v4  ;;  %v1472_v50 = vcombine.low %v3985_v33, %v3974_v61  ;;  %v4743_v21 = vld [vmem:[#allocation13_spill] sm:$0xff]  ;;  %v4004_v41 = vpop.permute.xlu1 %1259 }
 0x212   : > { %4737 = vst [vmem:[#allocation45_spill] sm:$0xff] %v3966_v60  ;;  %4745 = vst [vmem:[#allocation14_spill] sm:$0xff] %v4004_v41  ;;  %v4009_v26 = vrot.slane %v492_v44, %v3346_v17  ;;  %v4751_v41 = vld [vmem:[#allocation18_spill] sm:$0xff]  ;;  %v772_v60 = vcombine.high %v754_v24, %v4723_v4 }
 0x214   : > { %4746 = vst [vmem:[#allocation13_spill] sm:$0xff] %v4009_v26 }
 0x215   : > { %808 = vrot.lane.b32.xlu0 %v754_v24, %s2885_s17  ;;  %1501 = vrot.lane.b32.xlu1 %v1421_v46, %s2886_s19  ;;  %v3993_v10 = vpop.permute.xlu0 %2004  ;;  %v4744_v46 = vcombine.low %v4742_v62, %v4743_v21  ;;  %v910_v24 = vcombine.high %v3902_v59, %v3893_v5 }
 0x216   : > { %4741 = vst [vmem:[#allocation46_spill] sm:$0xff] %v3993_v10 }
 0x217   : > { %v1242_v27 = vrot.slane %v4744_v46, %v3346_v17  ;;  %v4748_v46 = vcombine.high %v3518_v31, %v3521_v39  ;;  %v672_v39 = vcombine.high %v3884_v35, %v3875_v63  ;;  %v924_v59 = vrot.slane %v910_v24, %v3346_v17 }
 0x219   : > { %1046 = vrot.lane.b32.xlu0 %v992_v1, %s2885_s17  ;;  %1741 = vrot.lane.b32.xlu1 %v1654_v28, %s2889_s26  ;;  %v1480_v28 = vrot.slane %v1472_v50, %v3346_v17  ;;  %v4011_v58 = vpop.permute.xlu0 %1287  ;;  %v524_v50 = vcombine.high %v4009_v26, %v4723_v4  ;;  %v1010_v26 = vcombine.high %v992_v1, %v4723_v4 }
 0x21a   : > { %v1357_v1 = vcombine.high %v3540_v3, %v3544_v30 }
 0x21d   : > { %1295 = vrot.lane.b32.xlu0 %v1242_v27, %s2887_s20  ;;  %1984 = vrot.lane.b32.xlu1 %v1897_v57, %s2889_s26  ;;  %v1719_v57 = vrot.slane %v4748_v46, %v3346_v17  ;;  %v4025_v14 = vpop.permute.xlu0 %2008 }
 0x21e   : > { %4749 = vst [vmem:[#allocation48_spill] sm:$0xff] %v4025_v14  ;;  %v4759_v14 = vld [vmem:[#allocation31_spill] sm:$0xff] }
 0x221   : > { %1533 = vrot.lane.b32.xlu0 %v1480_v28, %s2887_s20  ;;  %2224 = vrot.lane.b32.xlu1 %v2130_v23, %s2890_s27  ;;  %v4750_v23 = vld [vmem:[#allocation17_spill] sm:$0xff] }
 0x222   : > { %v4752_v6 = vcombine.high %v4750_v23, %v4751_v41  ;;  %v4756_v23 = vld [vmem:[#allocation15_spill] sm:$0xff] }
 0x223   : > { %v4015_v22 = vpop.permute.xlu1 %804 }
 0x224   : > { %4747 = vst [vmem:[#allocation47_spill] sm:$0xff] %v4015_v22  ;;  %v1962_v10 = vrot.slane %v4752_v6, %v3346_v17  ;;  %v1373_v6 = vcombine.high %v3546_v54, %v3550_v12  ;;  %v4765_v22 = vld [vmem:[#allocation33_spill] sm:$0xff] }
 0x225   : > { %1773 = vrot.lane.b32.xlu0 %v1719_v57, %s2888_s22  ;;  %557 = vrot.lane.b32.xlu1 %v524_v50, %s2884_s8  ;;  %v2368_v50 = vcombine.high %v3914_v29, %v4723_v4  ;;  %v1252_v29 = vcombine.high %v1242_v27, %v4723_v4  ;;  %v4071_v27 = vrot.slane %v1357_v1, %v3187_v56  ;;  %s2625_s8 = scalar_lea.hbm %s4649_s3, %s2715_s11 }
 0x226   : > { %v4062_v54 = vrot.slane %v1373_v6, %v3187_v56 }
 0x227   : > { %v4027_v44 = vpop.permute.xlu1 %2204 }
 0x228   : > { %v1404_v3 = vcombine.low %v4071_v27, %v4062_v54 }
 0x229   : > { %2016 = vrot.lane.b32.xlu0 %v1962_v10, %s2888_s22  ;;  %812 = vrot.lane.b32.xlu1 %v772_v60, %s2886_s19  ;;  %v686_v60 = vrot.slane %v672_v39, %v3346_v17  ;;  %v4757_v39 = vld [vmem:[#allocation16_spill] sm:$0xff] }
 0x22a   : > { %v1412_v1 = vrot.slane %v1404_v3, %v3346_v17 }
 0x22b   : > { %v4038_v31 = vpop.permute.xlu1 %2442  ;;  %v4040_v46 = vpop.permute.xlu0 %1042  ;;  %v704_v3 = vcombine.high %v686_v60, %v4723_v4 }
 0x22c   : > { %4753 = vst [vmem:[#allocation17_spill] sm:$0xff] %v4040_v46  ;;  %v4762_v46 = vld [vmem:[#allocation27_spill] sm:$0xff] }
 0x22d   : > { %2462 = vrot.lane.b32.xlu0 %v2368_v50, %s2890_s27  ;;  %1050 = vrot.lane.b32.xlu1 %v1010_v26, %s2886_s19  ;;  %v1490_v26 = vcombine.high %v1480_v28, %v4723_v4  ;;  %v4758_v50 = vcombine.low %v4756_v23, %v4757_v39  ;;  %v1723_v28 = vcombine.high %v1719_v57, %v4723_v4 }
 0x22f   : > { %v4051_v63 = vpop.permute.xlu1 %1729  ;;  %v4053_v35 = vpop.permute.xlu0 %2232  ;;  %v1174_v6 = vrot.slane %v4758_v50, %v3346_v17  ;;  %v4760_v50 = vld [vmem:[#allocation29_spill] sm:$0xff] }
 0x230   : > { %v724_v9 = vcombine.high %v4760_v50, %v4759_v14  ;;  %v493_v14 = vcombine.high %v3982_v40, %v3971_v32  ;;  %v4764_v50 = vld [vmem:[#allocation35_spill] sm:$0xff]  ;;  %v4767_v32 = vld [vmem:[#allocation32_spill] sm:$0xff]  ;;  %v4768_v40 = vld [vmem:[#allocation30_spill] sm:$0xff] }
 0x231   : > { %780 = vrot.lane.b32.xlu0 %v686_v60, %s2885_s17  ;;  %1299 = vrot.lane.b32.xlu1 %v1252_v29, %s2889_s26 }
 0x233   : > { %v4064_v12 = vpop.permute.xlu1 %2212  ;;  %v4066_v5 = vpop.permute.xlu0 %2470 }
 0x234   : > { %4754 = vst [vmem:[#allocation18_spill] sm:$0xff] %v4064_v12  ;;  %v962_v12 = vcombine.high %v4765_v22, %v4764_v50 }
 0x235   : > { %1018 = vrot.lane.b32.xlu0 %v924_v59, %s2885_s17  ;;  %1537 = vrot.lane.b32.xlu1 %v1490_v26, %s2889_s26  ;;  %v1966_v26 = vcombine.high %v1962_v10, %v4723_v4  ;;  %v4763_v10 = vld [vmem:[#allocation26_spill] sm:$0xff] }
 0x237   : > { %v4077_v30 = vpop.permute.xlu1 %2450  ;;  %v4079_v41 = vpop.permute.xlu0 %1757 }
 0x238   : > { %4755 = vst [vmem:[#allocation49_spill] sm:$0xff] %v4077_v30  ;;  %v708_v30 = vcombine.high %v4763_v10, %v4762_v46  ;;  %v4766_v46 = vcombine.high %v3247_v47, %v3250_v38  ;;  %v4135_v10 = vrot.slane %v962_v12, %v3187_v56  ;;  %v656_v12 = vcombine.high %v3819_v36, %v3836_v45 }
 0x239   : > { %1267 = vrot.lane.b32.xlu0 %v1174_v6, %s2887_s20  ;;  %1777 = vrot.lane.b32.xlu1 %v1723_v28, %s2890_s27  ;;  %v4761_v28 = vcombine.high %v3529_v19, %v3532_v55  ;;  %v894_v36 = vcombine.high %v3848_v52, %v3864_v8  ;;  %v4769_v52 = vcombine.high %v4742_v62, %v4743_v21 }
 0x23a   : > { %v1894_v60 = vrot.slane %v4766_v46, %v3346_v17 }
 0x23b   : > { %v4088_v24 = vpop.permute.xlu1 %2228  ;;  %v4090_v29 = vpop.permute.xlu0 %2240  ;;  %v1651_v7 = vrot.slane %v4761_v28, %v3346_v17  ;;  %v942_v28 = vcombine.high %v924_v59, %v4723_v4  ;;  %v507_v59 = vrot.slane %v493_v14, %v3346_v17  ;;  %v1249_v8 = vrot.slane %v4769_v52, %v3346_v17 }
 0x23d   : > { %1505 = vrot.lane.b32.xlu0 %v1412_v1, %s2887_s20  ;;  %2020 = vrot.lane.b32.xlu1 %v1966_v26, %s2890_s27  ;;  %v4114_v26 = vrot.slane %v724_v9, %v3187_v56  ;;  %v946_v9 = vcombine.high %v4768_v40, %v4767_v32  ;;  %v640_v40 = vcombine.high %v3828_v37, %v3840_v42 }
 0x23f   : > { %v4098_v57 = vpop.permute.xlu1 %2200  ;;  %v4100_v49 = vpop.permute.xlu0 %2478  ;;  %v4144_v50 = vrot.slane %v946_v9, %v3187_v56  ;;  %v4161_v9 = vrot.slane %v656_v12, %v3187_v56  ;;  %v4174_v42 = vrot.slane %v640_v40, %v3187_v56  ;;  %v878_v12 = vcombine.high %v3855_v13, %v3870_v43 }
 0x240   : > { %v4193_v43 = vrot.slane %v894_v36, %v3187_v56 }
 0x241   : > { %1745 = vrot.lane.b32.xlu0 %v1651_v7, %s2888_s22  ;;  %784 = vrot.lane.b32.xlu1 %v704_v3, %s2886_s19  ;;  %v4126_v3 = vrot.slane %v708_v30, %v3187_v56  ;;  %v1184_v30 = vcombine.high %v1174_v6, %v4723_v4  ;;  %v993_v46 = vcombine.low %v4144_v50, %v4135_v10 }
 0x242   : > { %v1422_v6 = vcombine.high %v1412_v1, %v4723_v4  ;;  %v687_v13 = vcombine.low %v4174_v42, %v4161_v9  ;;  %v4203_v52 = vrot.slane %v878_v12, %v3187_v56 }
 0x243   : > { %v2439_v19 = vpop.permute.xlu1 %2438  ;;  %v4118_v55 = vpop.permute.xlu0 %1525  ;;  %v755_v22 = vcombine.low %v4126_v3, %v4114_v26  ;;  %v1001_v1 = vrot.slane %v993_v46, %v3346_v17 }
 0x244   : > { %v2493_v37 = vsel %vm584_vm5, %v3741_v53, %v2439_v19  ;;  %v4771_v53 = vld [vmem:[#allocation20_spill] sm:$0xff] }
 0x245   : > { %1988 = vrot.lane.b32.xlu0 %v1894_v60, %s2888_s22  ;;  %1022 = vrot.lane.b32.xlu1 %v942_v28, %s2886_s19  ;;  %v763_v14 = vrot.slane %v755_v22, %v3346_v17  ;;  %v1655_v22 = vcombine.high %v1651_v7, %v4723_v4  ;;  %v4770_v7 = vld [vmem:[#allocation19_spill] sm:$0xff]  ;;  %v2494_v40 = vsel %vm586_vm6, %v2493_v37, %v4038_v31 }
 0x246   : > { %v4772_v19 = vcombine.high %v4770_v7, %v4771_v53  ;;  %v695_v37 = vrot.slane %v687_v13, %v3346_v17 }
 0x247   : > { %v4137_v47 = vpop.permute.xlu1 %1753  ;;  %v4139_v38 = vpop.permute.xlu0 %1765 }
 0x248   : > { %v439_v46 = vrot.slane %v4772_v19, %v3346_v17 }
 0x249   : > { %561 = vrot.lane.b32.xlu0 %v507_v59, %s2885_s17  ;;  %1271 = vrot.lane.b32.xlu1 %v1184_v30, %s2889_s26 }
 0x24b   : > { %v1726_v28 = vpop.permute.xlu1 %1725  ;;  %v4152_v32 = vpop.permute.xlu0 %2248 }
 0x24c   : > { %v1780_v7 = vsel %vm584_vm5, %v3774_v25, %v1726_v28  ;;  %v1405_v25 = vcombine.high %v4071_v27, %v4062_v54 }
 0x24d   : > { %816 = vrot.lane.b32.xlu0 %v763_v14, %s2887_s20  ;;  %1509 = vrot.lane.b32.xlu1 %v1422_v6, %s2889_s26  ;;  %v1473_v6 = vcombine.high %v3985_v33, %v3974_v61  ;;  %v925_v61 = vcombine.low %v4203_v52, %v4193_v43  ;;  %v1781_v12 = vsel %vm586_vm6, %v1780_v7, %v4051_v63 }
 0x24e   : > { %v525_v63 = vcombine.high %v507_v59, %v4723_v4  ;;  %v773_v59 = vcombine.high %v763_v14, %v4723_v4  ;;  %v457_v14 = vcombine.high %v439_v46, %v4723_v4 }
 0x24f   : > { %v4165_v45 = vpop.permute.xlu1 %2208  ;;  %v4167_v30 = vpop.permute.xlu0 %2486  ;;  %v1487_v31 = vrot.slane %v1473_v6, %v3346_v17 }
 0x251   : > { %1054 = vrot.lane.b32.xlu0 %v1001_v1, %s2887_s20  ;;  %1749 = vrot.lane.b32.xlu1 %v1655_v22, %s2890_s27 }
 0x253   : > { %v2447_v22 = vpop.permute.xlu1 %2446  ;;  %v4197_v62 = vpop.permute.xlu0 %2466 }
 0x254   : > { %v4200_v21 = vsel %vm588_vm7, %v2494_v40, %v2447_v22  ;;  %v1898_v40 = vcombine.high %v1894_v60, %v4723_v4  ;;  %v933_v22 = vrot.slane %v925_v61, %v3346_v17  ;;  %v4773_v60 = vcombine.high %v4756_v23, %v4757_v39 }
 0x255   : > { %1303 = vrot.lane.b32.xlu0 %v1249_v8, %s2888_s22  ;;  %533 = vrot.lane.b32.xlu1 %v439_v46, %s2885_s17  ;;  %v1787_v61 = vsel %vm584_vm5, %v3761_v48, %v4137_v47  ;;  %v477_v48 = vcombine.high %v3085_v11, %v3111_v34  ;;  %v4774_v11 = vld [vmem:[#allocation11_spill] sm:$0xff]  ;;  %v4775_v34 = vld [vmem:[#allocation10_spill] sm:$0xff]  ;;  %v4777_v46 = vld [vmem:[#allocation9_spill] sm:$0xff]  ;;  %s2613_s17 = scalar_lea.sflag [#allocation5], %s3010_s5 }
 0x256   : > { %v1181_v7 = vrot.slane %v4773_v60, %v3346_v17  ;;  %v1788_v54 = vsel %vm586_vm6, %v1787_v61, %v4079_v41  ;;  %v409_v60 = vcombine.high %v4775_v34, %v4774_v11 }
 0x257   : > { %v1494_v33 = vpop.permute.xlu1 %1493  ;;  %v4209_v36 = vpop.permute.xlu0 %2236 }
 0x258   : > { %v1548_v41 = vsel %vm584_vm5, %v3809_v18, %v1494_v33  ;;  %v4270_v18 = vrot.slane %v477_v48, %v3187_v56  ;;  %v4776_v33 = vld [vmem:[#allocation12_spill] sm:$0xff] }
 0x259   : > { %1541 = vrot.lane.b32.xlu0 %v1487_v31, %s2888_s22  ;;  %788 = vrot.lane.b32.xlu1 %v695_v37, %s2887_s20  ;;  %v393_v61 = vcombine.high %v4777_v46, %v4776_v33  ;;  %v2500_v46 = vsel %vm584_vm5, %v3799_v0, %v4197_v62 }
 0x25b   : > { %v1734_v53 = vpop.permute.xlu1 %1733  ;;  %v4219_v19 = vpop.permute.xlu0 %2474 }
 0x25c   : > { %v1782_v6 = vsel %vm588_vm7, %v1781_v12, %v1734_v53  ;;  %v4246_v53 = vrot.slane %v1405_v25, %v3346_v17  ;;  %v461_v25 = vcombine.high %v3071_v2, %v3100_v20  ;;  %v705_v2 = vcombine.high %v695_v37, %v4723_v4 }
 0x25d   : > { %1992 = vrot.lane.b32.xlu0 %v1898_v40, %s2890_s27  ;;  %1026 = vrot.lane.b32.xlu1 %v933_v22, %s2887_s20  ;;  %v1011_v40 = vcombine.high %v1001_v1, %v4723_v4  ;;  %v1253_v20 = vcombine.high %v1249_v8, %v4723_v4  ;;  %v943_v37 = vcombine.high %v933_v22, %v4723_v4 }
 0x25e   : > { %v1491_v8 = vcombine.high %v1487_v31, %v4723_v4  ;;  %v756_v22 = vcombine.high %v4126_v3, %v4114_v26  ;;  %v994_v26 = vcombine.high %v4144_v50, %v4135_v10 }
 0x25f   : > { %v4228_v28 = vpop.permute.xlu1 %2216  ;;  %v1522_v13 = vpop.permute.xlu0 %1521 }
 0x260   : > { %v1008_v50 = vrot.slane %v994_v26, %v3346_v17 }
 0x261   : > { %565 = vrot.lane.b32.xlu0 %v525_v63, %s2886_s19  ;;  %1275 = vrot.lane.b32.xlu1 %v1181_v7, %s2888_s22 }
 0x263   : > { %v4240_v12 = vpop.permute.xlu1 %2454  ;;  %v1762_v27 = vpop.permute.xlu0 %1761 }
 0x264   : > { %v4249_v23 = vsel %vm588_vm7, %v1788_v54, %v1762_v27 }
 0x265   : > { %820 = vrot.lane.b32.xlu0 %v773_v59, %s2889_s26  ;;  %1513 = vrot.lane.b32.xlu1 %v4246_v53, %s2888_s22  ;;  %v4280_v59 = vrot.slane %v461_v25, %v3187_v56 }
 0x267   : > { %v1498_v39 = vpop.permute.xlu1 %1497  ;;  %v2245_v47 = vpop.permute.xlu0 %2244  ;;  %v508_v48 = vcombine.low %v4280_v59, %v4270_v18 }
 0x268   : > { %v4263_v63 = vsel %vm586_vm6, %v1548_v41, %v1498_v39 }
 0x269   : > { %537 = vrot.lane.b32.xlu1 %v457_v14, %s2886_s19  ;;  %1058 = vrot.lane.b32.xlu0 %v1011_v40, %s2889_s26  ;;  %v4296_v14 = vrot.slane %v409_v60, %v3187_v56  ;;  %v1555_v40 = vsel %vm584_vm5, %v3826_v16, %v1522_v13  ;;  %v516_v25 = vrot.slane %v508_v48, %v3346_v17  ;;  %s2808_s19 = scalar_lea.vmem %s2628_s4, 256 }
 0x26a   : > { %v1556_v31 = vsel %vm586_vm6, %v1555_v40, %v4118_v55  ;;  %v2262_v13 = vsel %vm584_vm5, %v3706_v51, %v4088_v24  ;;  %v688_v55 = vcombine.high %v4174_v42, %v4161_v9  ;;  %v770_v24 = vrot.slane %v756_v22, %v3346_v17  ;;  %p2809_p11 = scmp.ne.s32.totalorder %s2628_s4, %s2808_s19 }
 0x26b   : > { %v1738_v1 = vpop.permute.xlu1 %1737  ;;  %v2483_v54 = vpop.permute.xlu0 %2482  ;;  %v2263_v3 = vsel %vm586_vm6, %v2262_v13, %v4053_v35  ;;  %v926_v9 = vcombine.high %v4203_v52, %v4193_v43  ;;  %v2501_v42 = vsel %vm586_vm6, %v2500_v46, %v4066_v5 }
 0x26c   : > { %v4277_v27 = vsel %vm590_vm8, %v1782_v6, %v1738_v1  ;;  %v4293_v6 = vrot.slane %v393_v61, %v3187_v56  ;;  %v1185_v56 = vcombine.high %v1181_v7, %v4723_v4  ;;  %v2264_v10 = vsel %vm588_vm7, %v2263_v3, %v4209_v36  ;;  %p2810_p13 = pnand %p2809_p11, %p4803_p12 }
 0x26d   : > { %792 = vrot.lane.b32.xlu1 %v705_v2, %s2889_s26  ;;  %1307 = vrot.lane.b32.xlu0 %v1253_v20, %s2890_s27  ;;  %v702_v35 = vrot.slane %v688_v55, %v3346_v17  ;;  %v2265_v0 = vsel %vm590_vm8, %v2264_v10, %v4090_v29  ;;  %v2502_v61 = vsel %vm588_vm7, %v2501_v42, %v4219_v19 }
 0x26e   : > { %v440_v16 = vcombine.low %v4293_v6, %v4296_v14  ;;  %v2266_v1 = vsel %vm592_vm9, %v2265_v0, %v2245_v47  ;;  %v2503_v5 = vsel %vm590_vm8, %v2502_v61, %v4100_v49  ;;  %v940_v2 = vrot.slane %v926_v9, %v3346_v17  ;;  %p2811_p4 = pneg %p2810_p13 }
 0x26f   : > { %v4286_v41 = vpop.permute.xlu1 %1980  ;;  %v4288_v39 = vpop.permute.xlu0 %1291  ;;  %v2267_v29 = vsel %vm594_vm10, %v2266_v1, %v4152_v32  ;;  %v1423_v19 = vcombine.high %v4246_v53, %v4723_v4  ;;  %v2504_v47 = vsel %vm592_vm9, %v2503_v5, %v2483_v54  ;;  %v526_v53 = vcombine.high %v516_v25, %v4723_v4 }
 0x270   : > { %v448_v51 = vrot.slane %v440_v16, %v3346_v17  ;;  %v2505_v32 = vsel %vm594_vm10, %v2504_v47, %v4167_v30  ;;  %v441_v30 = vcombine.high %v4293_v6, %v4296_v14  ;;  %v1012_v3 = vcombine.high %v1008_v50, %v4723_v4  ;;  %v4779_v14 = vld [vmem:[#allocation23_spill] sm:$0xff] }
 0x271   : > { %1030 = vrot.lane.b32.xlu1 %v943_v37, %s2889_s26  ;;  %1545 = vrot.lane.b32.xlu0 %v1491_v8, %s2890_s27 }
 0x272   : > { %v458_v8 = vcombine.high %v448_v51, %v4723_v4  ;;  %v455_v55 = vrot.slane %v441_v30, %v3346_v17 }
 0x273   : > { %v4305_v11 = vpop.permute.xlu1 %2220  ;;  %v1530_v34 = vpop.permute.xlu0 %1529 }
 0x274   : > { %v4316_v60 = vsel %vm588_vm7, %v1556_v31, %v1530_v34  ;;  %v706_v31 = vcombine.high %v702_v35, %v4723_v4  ;;  %v774_v34 = vcombine.high %v770_v24, %v4723_v4 }
 0x275   : > { %1279 = vrot.lane.b32.xlu1 %v1185_v56, %s2890_s27  ;;  %569 = vrot.lane.b32.xlu0 %v516_v25, %s2887_s20  ;;  %v4778_v25 = vld [vmem:[#allocation38_spill] sm:$0xff] }
 0x276   : > { %v2255_v16 = vsel %vm584_vm5, %v4778_v25, %v4098_v57 }
 0x277   : > { %v4326_v7 = vpop.permute.xlu1 %2458  ;;  %v4328_v33 = vpop.permute.xlu0 %1769 }
 0x279   : > { %541 = vrot.lane.b32.xlu1 %v448_v51, %s2887_s20  ;;  %824 = vrot.lane.b32.xlu0 %v770_v24, %s2888_s22  ;;  %v1317_v51 = vsel %vm584_vm5, %v4779_v14, %v3926_v15  ;;  %v2256_v24 = vsel %vm586_vm6, %v2255_v16, %v4027_v44  ;;  %v459_v44 = vcombine.high %v455_v55, %v4723_v4  ;;  %v4786_v16 = vld [vmem:[#allocation40_spill] sm:$0xff]  ;;  %s2892_s20 = smov [#allocation6]  }
 0x27a   : > { %v1318_v57 = vsel %vm586_vm6, %v1317_v51, %v4011_v58  ;;  %v2257_v46 = vsel %vm588_vm7, %v2256_v24, %v4165_v45  ;;  %s2812_s16 = sshll.u32 %s2892_s20, 4  ;;  %s2813_s16 = int_to_ptr.vmem [resolvable:$false] %s2812_s16 }
 0x27b   : > { %v4347_v62 = vpop.permute.xlu1 %776  ;;  %v4349_v36 = vpop.permute.xlu0 %2012  ;;  %p2815_p5 = scmp.lt.s32.totalorder %s2628_s4, %s2813_s16 }
 0x27d   : > { %796 = vrot.lane.b32.xlu1 %v702_v35, %s2888_s22  ;;  %1062 = vrot.lane.b32.xlu0 %v1008_v50, %s2888_s22  ;;  %v4780_v50 = vld [vmem:[#allocation18_spill] sm:$0xff] }
 0x27e   : > { %v2258_v58 = vsel %vm590_vm8, %v2257_v46, %v4780_v50  ;;  %v4789_v46 = vld [vmem:[#allocation24_spill] sm:$0xff] }
 0x27f   : > { %v4358_v43 = vpop.permute.xlu1 %1014  ;;  %v2253_v52 = vpop.permute.xlu0 %2252  ;;  %v2259_v45 = vsel %vm592_vm9, %v2258_v58, %v4228_v28 }
 0x280   : > { %v2268_v20 = vsel %vm596_vm11, %v2267_v29, %v2253_v52  ;;  %v2891_v52 = vmov 0  }
 0x281   : > { %v2272_v48 = vrot.slane %v2268_v20, 4  ;;  %1034 = vrot.lane.b32.xlu1 %v940_v2, %s2888_s22  ;;  %1517 = vrot.lane.b32.xlu0 %v1423_v19, %s2890_s27 }
 0x282   : > { %2779 = vset.pattern.permute.xlu0 %v2891_v52 }
 0x283   : > { %2276 = vst [vmem:[#allocation2 + $0x20] sm:$0xf0] %v2272_v48  ;;  %v4369_v49 = vpop.permute.xlu1 %1263  ;;  %v2491_v37 = vpop.permute.xlu0 %2490 }
 0x284   : > { %v2506_v54 = vsel %vm596_vm11, %v2505_v32, %v2491_v37 }
 0x285   : > { %2508 = vst [vmem:[#allocation2 + $0x38] sm:$0xf] %v2506_v54  ;;  %545 = vrot.lane.b32.xlu1 %v458_v8, %s2889_s26  ;;  %573 = vrot.lane.b32.xlu0 %v526_v53, %s2889_s26  ;;  %v4784_v8 = vld [vmem:[#allocation17_spill] sm:$0xff] }
 0x286   : > { %v4785_v53 = vld [vmem:[#allocation37_spill] sm:$0xff] }
 0x287   : > { %v1502_v40 = vpop.permute.xlu1 %1501  ;;  %v809_v22 = vpop.permute.xlu0 %808  ;;  %v1076_v54 = vsel %vm584_vm5, %v4785_v53, %v4784_v8 }
 0x288   : > { %v4384_v56 = vsel %vm588_vm7, %v4263_v63, %v1502_v40  ;;  %v509_v63 = vcombine.high %v4280_v59, %v4270_v18  ;;  %v1319_v18 = vsel %vm588_vm7, %v1318_v57, %v4288_v39  ;;  %v2260_v39 = vsel %vm594_vm10, %v2259_v45, %v4305_v11  ;;  %v4781_v11 = vld [vmem:[#allocation47_spill] sm:$0xff]  ;;  %v4791_v45 = vld [vmem:[#allocation46_spill] sm:$0xff] }
 0x289   : > { %800 = vrot.lane.b32.xlu1 %v706_v31, %s2890_s27  ;;  %828 = vrot.lane.b32.xlu0 %v774_v34, %s2890_s27  ;;  %v1790_v57 = vsel %vm590_vm8, %v4249_v23, %v4139_v38 }
 0x28a   : > { %v523_v10 = vrot.slane %v509_v63, %v3346_v17  ;;  %v944_v17 = vcombine.high %v940_v2, %v4723_v4  ;;  %v4782_v2 = vld [vmem:[#allocation34_spill] sm:$0xff] }
 0x28b   : > { %v4391_v13 = vpop.permute.xlu1 %1741  ;;  %v1047_v26 = vpop.permute.xlu0 %1046  ;;  %v838_v19 = vsel %vm584_vm5, %v4782_v2, %v4781_v11 }
 0x28c   : > { %v2519_v6 = vld [vmem:[#allocation2 + $0x38] sm:$0xf]  ;;  %v527_v28 = vcombine.high %v523_v10, %v4723_v4  ;;  %v839_v47 = vsel %vm586_vm6, %v838_v19, %v809_v22  ;;  %v4783_v4 = vld [vmem:[#allocation49_spill] sm:$0xff]  ;;  %v1077_v31 = vsel %vm586_vm6, %v1076_v54, %v1047_v26  ;;  %v1784_v54 = vsel %vm592_vm9, %v4277_v27, %v4391_v13 }
 0x28d   : > { %549 = vrot.lane.b32.xlu1 %v455_v55, %s2888_s22  ;;  %1066 = vrot.lane.b32.xlu0 %v1012_v3, %s2890_s27  ;;  %v2496_v37 = vsel %vm590_vm8, %v4200_v21, %v4783_v4  ;;  %v831_v55 = vsel %vm584_vm5, %v4786_v16, %v4347_v62  ;;  %v4788_v62 = vld [vmem:[#allocation43_spill] sm:$0xff] }
 0x28e   : > { %2706 = vmatprep.subr.msk.mxu0 %vm2530_vm12, %v2519_v6  ;;  %v2497_v40 = vsel %vm592_vm9, %v2496_v37, %v4240_v12  ;;  %v4794_v16 = vld [vmem:[#allocation39_spill] sm:$0xff] }
 0x28f   : > { %v4411_v59 = vpop.permute.xlu1 %1984  ;;  %v1296_v15 = vpop.permute.xlu0 %1295  ;;  %v2498_v22 = vsel %vm594_vm10, %v2497_v40, %v4326_v7  ;;  %v4787_v7 = vld [vmem:[#allocation41_spill] sm:$0xff] }
 0x290   : > { %v4416_v35 = vsel %vm590_vm8, %v1319_v18, %v1296_v15  ;;  %v1069_v26 = vsel %vm584_vm5, %v4787_v7, %v4358_v43  ;;  %v2030_v18 = vsel %vm584_vm5, %v4789_v46, %v4788_v62  ;;  %v1791_v15 = vsel %vm592_vm9, %v1790_v57, %v4328_v33  ;;  %v4790_v43 = vld [vmem:[#allocation45_spill] sm:$0xff] }
 0x291   : > { %553 = vrot.lane.b32.xlu1 %v459_v44, %s2890_s27  ;;  %577 = vrot.lane.b32.xlu0 %v523_v10, %s2888_s22  ;;  %v2031_v44 = vsel %vm586_vm6, %v2030_v18, %v4790_v43  ;;  %s2814_s22 = scalar_lea.vmem %s2813_s16, 512 }
 0x292   : > { %v2032_v38 = vsel %vm588_vm7, %v2031_v44, %v4791_v45  ;;  %p2816_p7 = scmp.lt.s32.totalorder %s2814_s22, %s2808_s19 }
 0x293   : > { %v2225_v9 = vpop.permute.xlu1 %2224  ;;  %v1534_v42 = vpop.permute.xlu0 %1533 }
 0x294   : > { %v2261_v0 = vsel %vm596_vm11, %v2260_v39, %v2225_v9  ;;  %v4430_v61 = vsel %vm590_vm8, %v4316_v60, %v1534_v42  ;;  %v2520_v60 = vld [vmem:[%s4648_s2] sm:$0xff]  ;;  %v4792_v39 = vld [vmem:[#allocation48_spill] sm:$0xff]  ;;  %p2817_p8 = por %p2816_p7, %p2815_p5 }
 0x295   : > { %v2271_v1 = vrot.slane %v2261_v0, 4  ;;  %1038 = vrot.lane.b32.xlu0 %v944_v17, %s2890_s27  ;;  %v2033_v9 = vsel %vm590_vm8, %v2032_v38, %v4792_v39 }
 0x296   : > { %v2034_v33 = vsel %vm592_vm9, %v2033_v9, %v4349_v36  ;;  %p2818_p10 = pnand %p2817_p8, %p2811_p4 }
 0x297   : > { %2275 = vst [vmem:[#allocation2 + $0x8] sm:$0xf0] %v2271_v1  ;;  %v558_v5 = vpop.permute.xlu1 %557  ;;  %v1774_v29 = vpop.permute.xlu0 %1773 }
 0x298   : > { %v1792_v10 = vsel %vm594_vm10, %v1791_v15, %v1774_v29 }
 0x299   : > { %581 = vrot.lane.b32.xlu0 %v527_v28, %s2890_s27 }
 0x29b   : > { %v813_v20 = vpop.permute.xlu1 %812  ;;  %v2017_v48 = vpop.permute.xlu0 %2016 }
 0x29c   : > { %v4443_v32 = vsel %vm588_vm7, %v839_v47, %v813_v20  ;;  %v2035_v17 = vsel %vm594_vm10, %v2034_v33, %v2017_v48  ;;  %v4793_v20 = vld [vmem:[#allocation13_spill] sm:$0xff]  ;;  %v4798_v33 = vld [vmem:[#allocation44_spill] sm:$0xff] }
 0x29d   : > { %2523 = vperm.xlu0 %2779, %v2520_v60   ;;  %v598_v48 = vsel %vm584_vm5, %v4793_v20, %v558_v5 }
 0x29f   : > { %v1051_v34 = vpop.permute.xlu1 %1050  ;;  %v2463_v30 = vpop.permute.xlu0 %2462 }
 0x2a0   : > { %v4457_v25 = vsel %vm588_vm7, %v1077_v31, %v1051_v34  ;;  %v2499_v21 = vsel %vm596_vm11, %v2498_v22, %v2463_v30 }
 0x2a1   : > { %2507 = vst [vmem:[#allocation2 + $0x40] sm:$0xf] %v2499_v21 }
 0x2a3   : > { %v4463_v3 = vpop.permute.xlu1 %1299  ;;  %v781_v12 = vpop.permute.xlu0 %780 }
 0x2a4   : > { %v832_v63 = vsel %vm586_vm6, %v831_v55, %v781_v12  ;;  %v4795_v55 = vld [vmem:[#allocation22_spill] sm:$0xff] }
 0x2a5   : > { %v2023_v12 = vsel %vm584_vm5, %v4795_v55, %v4794_v16 }
 0x2a7   : > { %v4469_v6 = vpop.permute.xlu1 %1537  ;;  %v1019_v14 = vpop.permute.xlu0 %1018 }
 0x2a8   : > { %v1070_v51 = vsel %vm586_vm6, %v1069_v26, %v1019_v14  ;;  %v2518_v24 = vld [vmem:[#allocation2 + $0x40] sm:$0xf]  ;;  %v4797_v26 = vld [vmem:[#allocation36_spill] sm:$0xff] }
 0x2a9   : > { %2707 = vmatpush1.msk.msra.mxu0 %vm2530_vm12, %v2518_v24 }
 0x2ab   : > { %v1778_v50 = vpop.permute.xlu1 %1777  ;;  %v4484_v58 = vpop.permute.xlu0 %1267 }
 0x2ac   : > { %v1793_v23 = vsel %vm596_vm11, %v1792_v10, %v1778_v50 }
 0x2ad   : > { %v1797_v42 = vrot.slane %v1793_v23, 4 }
 0x2af   : > { %1801 = vst [vmem:[#allocation2 + $0x28] sm:$0xf0] %v1797_v42  ;;  %v2021_v0 = vpop.permute.xlu1 %2020  ;;  %v1506_v1 = vpop.permute.xlu0 %1505 }
 0x2b0   : > { %v2036_v29 = vsel %vm596_vm11, %v2035_v17, %v2021_v0  ;;  %v4497_v28 = vsel %vm590_vm8, %v4384_v56, %v1506_v1  ;;  %v4799_v17 = vld [vmem:[#allocation25_spill] sm:$0xff]  ;;  %v1559_v1 = vsel %vm592_vm9, %v4430_v61, %v4469_v6 }
 0x2b1   : > { %2038 = vst [vmem:[#allocation2 + $0x20] sm:$0xf] %v2036_v29  ;;  %v1310_v0 = vsel %vm584_vm5, %v4799_v17, %v4798_v33  ;;  %v4800_v29 = vld [vmem:[#allocation14_spill] sm:$0xff] }
 0x2b3   : > { %v785_v52 = vpop.permute.xlu1 %784  ;;  %v1746_v11 = vpop.permute.xlu0 %1745 }
 0x2b4   : > { %v4500_v2 = vsel %vm588_vm7, %v832_v63, %v785_v52  ;;  %v1785_v40 = vsel %vm594_vm10, %v1784_v54, %v1746_v11  ;;  %v4796_v63 = vld [vmem:[#allocation42_spill] sm:$0xff]  ;;  %v1311_v52 = vsel %vm586_vm6, %v1310_v0, %v4800_v29 }
 0x2b5   : > { %v2024_v7 = vsel %vm586_vm6, %v2023_v12, %v4796_v63 }
 0x2b6   : > { %v2025_v14 = vsel %vm588_vm7, %v2024_v7, %v4797_v26 }
 0x2b7   : > { %v1023_v19 = vpop.permute.xlu1 %1022  ;;  %v1989_v60 = vpop.permute.xlu0 %1988 }
 0x2b8   : > { %v4503_v36 = vsel %vm588_vm7, %v1070_v51, %v1023_v19  ;;  %v2517_v47 = vld [vmem:[#allocation2 + $0x20] sm:$0xff]  ;;  %v2026_v51 = vsel %vm590_vm8, %v2025_v14, %v4286_v41  ;;  %v1312_v19 = vsel %vm588_vm7, %v1311_v52, %v4369_v49 }
 0x2b9   : > { %2561 = vmatprep.subr.mxu0 %v2517_v47  ;;  %v2027_v24 = vsel %vm592_vm9, %v2026_v51, %v4411_v59  ;;  %v1321_v59 = vsel %vm592_vm9, %v4416_v35, %v4463_v3  ;;  %v1313_v47 = vsel %vm590_vm8, %v1312_v19, %v4484_v58 }
 0x2ba   : > { %v2028_v57 = vsel %vm594_vm10, %v2027_v24, %v1989_v60 }
 0x2bb   : > { %v1272_v4 = vpop.permute.xlu1 %1271  ;;  %v562_v37 = vpop.permute.xlu0 %561 }
 0x2bc   : > { %v4508_v56 = vsel %vm586_vm6, %v598_v48, %v562_v37  ;;  %v1314_v20 = vsel %vm592_vm9, %v1313_v47, %v1272_v4 }
 0x2bf   : > { %v1510_v8 = vpop.permute.xlu1 %1509  ;;  %v4510_v53 = vpop.permute.xlu0 %816 }
 0x2c0   : > { %v1552_v58 = vsel %vm592_vm9, %v4497_v28, %v1510_v8  ;;  %v841_v7 = vsel %vm590_vm8, %v4443_v32, %v4510_v53 }
 0x2c3   : > { %v1750_v22 = vpop.permute.xlu1 %1749  ;;  %v4516_v31 = vpop.permute.xlu0 %1054 }
 0x2c4   : > { %v1786_v34 = vsel %vm596_vm11, %v1785_v40, %v1750_v22  ;;  %v1079_v32 = vsel %vm590_vm8, %v4457_v25, %v4516_v31 }
 0x2c5   : > { %v1796_v5 = vrot.slane %v1786_v34, 4 }
 0x2c7   : > { %1800 = vst [vmem:[#allocation2 + $0x48] sm:$0xf0] %v1796_v5  ;;  %v4519_v30 = vpop.permute.xlu1 %533  ;;  %v1304_v21 = vpop.permute.xlu0 %1303 }
 0x2c8   : > { %v1322_v38 = vsel %vm594_vm10, %v1321_v59, %v1304_v21 }
 0x2cb   : > { %v789_v27 = vpop.permute.xlu1 %788  ;;  %v1542_v13 = vpop.permute.xlu0 %1541 }
 0x2cc   : > { %v1560_v35 = vsel %vm594_vm10, %v1559_v1, %v1542_v13  ;;  %v834_v13 = vsel %vm590_vm8, %v4500_v2, %v789_v27  ;;  %v4801_v27 = vld [vmem:[#allocation28_spill] sm:$0xff] }
 0x2cf   : > { %v4533_v62 = vpop.permute.xlu1 %1026  ;;  %v1993_v46 = vpop.permute.xlu0 %1992 }
 0x2d0   : > { %v2029_v18 = vsel %vm596_vm11, %v2028_v57, %v1993_v46  ;;  %v1072_v17 = vsel %vm590_vm8, %v4503_v36, %v4533_v62 }
 0x2d1   : > { %2037 = vst [vmem:[#allocation2 + $0x8] sm:$0xf] %v2029_v18 }
 0x2d3   : > { %v1276_v15 = vpop.permute.xlu1 %1275  ;;  %v4536_v43 = vpop.permute.xlu0 %565 }
 0x2d4   : > { %v1315_v61 = vsel %vm594_vm10, %v1314_v20, %v1276_v15  ;;  %v4802_v15 = vld [vmem:[#allocation21_spill] sm:$0xff]  ;;  %v600_v29 = vsel %vm588_vm7, %v4508_v56, %v4536_v43  ;;  %v2509_v43 = vld [vmem:[%s4647_s1] sm:$0xff] }
 0x2d7   : > { %v1514_v44 = vpop.permute.xlu1 %1513  ;;  %v821_v10 = vpop.permute.xlu0 %820 }
 0x2d8   : > { %v2516_v50 = vld [vmem:[#allocation2 + $0x8] sm:$0xff]  ;;  %v1553_v21 = vsel %vm594_vm10, %v1552_v58, %v1514_v44  ;;  %v842_v26 = vsel %vm592_vm9, %v841_v7, %v821_v10  ;;  %v585_v44 = vsel %vm584_vm5, %v4802_v15, %v4801_v27 }
 0x2d9   : > { %2562 = vmatpush1.msra.mxu0 %v2516_v50  ;;  %v587_v50 = vsel %vm586_vm6, %v585_v44, %v4519_v30 }
 0x2db   : > { %v4538_v45 = vpop.permute.xlu1 %537  ;;  %v1059_v41 = vpop.permute.xlu0 %1058 }
 0x2dc   : > { %v1080_v10 = vsel %vm592_vm9, %v1079_v32, %v1059_v41  ;;  %v589_v25 = vsel %vm588_vm7, %v587_v50, %v4538_v45 }
 0x2df   : > { %v793_v23 = vpop.permute.xlu1 %792  ;;  %v1308_v39 = vpop.permute.xlu0 %1307 }
 0x2e0   : > { %v1323_v9 = vsel %vm596_vm11, %v1322_v38, %v1308_v39  ;;  %v835_v28 = vsel %vm592_vm9, %v834_v13, %v793_v23 }
 0x2e1   : > { %v1327_v42 = vrot.slane %v1323_v9, 4 }
 0x2e3   : > { %1331 = vst [vmem:[#allocation2 + $0x10] sm:$0xf0] %v1327_v42  ;;  %v1031_v3 = vpop.permute.xlu1 %1030  ;;  %v1546_v11 = vpop.permute.xlu0 %1545 }
 0x2e4   : > { %v1561_v60 = vsel %vm596_vm11, %v1560_v35, %v1546_v11  ;;  %v1073_v45 = vsel %vm592_vm9, %v1072_v17, %v1031_v3 }
 0x2e5   : > { %1563 = vst [vmem:[#allocation2 + $0x28] sm:$0xf] %v1561_v60 }
 0x2e7   : > { %v1280_v6 = vpop.permute.xlu1 %1279  ;;  %v570_v48 = vpop.permute.xlu0 %569 }
 0x2e8   : > { %v1316_v37 = vsel %vm596_vm11, %v1315_v61, %v1280_v6  ;;  %v601_v11 = vsel %vm590_vm8, %v600_v29, %v570_v48 }
 0x2e9   : > { %v1326_v54 = vrot.slane %v1316_v37, 4 }
 0x2eb   : > { %1330 = vst [vmem:[#allocation2 + $0x18] sm:$0xf0] %v1326_v54  ;;  %v542_v40 = vpop.permute.xlu1 %541  ;;  %v825_v22 = vpop.permute.xlu0 %824 }
 0x2ec   : > { %v2515_v34 = vld [vmem:[#allocation2 + $0x28] sm:$0xff]  ;;  %v843_v8 = vsel %vm594_vm10, %v842_v26, %v825_v22  ;;  %v591_v39 = vsel %vm590_vm8, %v589_v25, %v542_v40 }
 0x2ed   : > { %2563 = vmatprep.subr.mxu0 %v2515_v34 }
 0x2ef   : > { %v797_v49 = vpop.permute.xlu1 %796  ;;  %v1063_v5 = vpop.permute.xlu0 %1062 }
 0x2f0   : > { %v836_v14 = vsel %vm594_vm10, %v835_v28, %v797_v49  ;;  %v1081_v59 = vsel %vm594_vm10, %v1080_v10, %v1063_v5 }
 0x2f3   : > { %v1035_v4 = vpop.permute.xlu1 %1034  ;;  %v1518_v16 = vpop.permute.xlu0 %1517 }
 0x2f4   : > { %v1554_v55 = vsel %vm596_vm11, %v1553_v21, %v1518_v16  ;;  %v1074_v0 = vsel %vm594_vm10, %v1073_v45, %v1035_v4 }
 0x2f5   : > { %1562 = vst [vmem:[#allocation2 + $0x48] sm:$0xf] %v1554_v55 }
 0x2f7   : > { %v546_v12 = vpop.permute.xlu1 %545  ;;  %v574_v63 = vpop.permute.xlu0 %573 }
 0x2f8   : > { %v593_v9 = vsel %vm592_vm9, %v591_v39, %v546_v12  ;;  %v602_v36 = vsel %vm592_vm9, %v601_v11, %v574_v63 }
 0x2fb   : > { %v801_v51 = vpop.permute.xlu1 %800  ;;  %v829_v24 = vpop.permute.xlu0 %828 }
 0x2fc   : > { %v837_v57 = vsel %vm596_vm11, %v836_v14, %v801_v51  ;;  %v844_v46 = vsel %vm596_vm11, %v843_v8, %v829_v24  ;;  %v2514_v18 = vld [vmem:[#allocation2 + $0x48] sm:$0xff] }
 0x2fd   : > { %v847_v2 = vrot.slane %v837_v57, 4  ;;  %v848_v53 = vrot.slane %v844_v46, 4  ;;  %2564 = vmatpush1.msra.mxu0 %v2514_v18 }
 0x2ff   : > { %851 = vst [vmem:[#allocation2 + $0x30] sm:$0xf0] %v847_v2  ;;  %852 = vst [vmem:[#allocation2] sm:$0xf0] %v848_v53  ;;  %v550_v38 = vpop.permute.xlu1 %549  ;;  %v1067_v23 = vpop.permute.xlu0 %1066 }
 0x300   : > { %v1082_v31 = vsel %vm596_vm11, %v1081_v59, %v1067_v23  ;;  %v595_v41 = vsel %vm594_vm10, %v593_v9, %v550_v38 }
 0x301   : > { %1084 = vst [vmem:[#allocation2 + $0x10] sm:$0xf] %v1082_v31 }
 0x303   : > { %v554_v42 = vpop.permute.xlu1 %553  ;;  %v578_v30 = vpop.permute.xlu0 %577 }
 0x304   : > { %v597_v33 = vsel %vm596_vm11, %v595_v41, %v554_v42  ;;  %v603_v62 = vsel %vm594_vm10, %v602_v36, %v578_v30 }
 0x305   : > { %605 = vst [vmem:[#allocation2 + $0x30] sm:$0xf] %v597_v33 }
 0x307   : > { %v1039_v1 = vpop.permute.xlu0 %1038 }
 0x308   : > { %v1075_v52 = vsel %vm596_vm11, %v1074_v0, %v1039_v1  ;;  %v2513_v35 = vld [vmem:[#allocation2 + $0x10] sm:$0xff] }
 0x309   : > { %1083 = vst [vmem:[#allocation2 + $0x18] sm:$0xf] %v1075_v52  ;;  %2565 = vmatprep.subr.mxu0 %v2513_v35 }
 0x30b   : > { %v582_v3 = vpop.permute.xlu0 %581 }
 0x30c   : > { %v604_v19 = vsel %vm596_vm11, %v603_v62, %v582_v3  ;;  %v2510_v47 = vld [vmem:[#allocation2 + $0x30] sm:$0xff] }
 0x30d   : > { %606 = vst [vmem:[#allocation2] sm:$0xf] %v604_v19 }
 0x310   : > { %v2512_v60 = vld [vmem:[#allocation2 + $0x18] sm:$0xff] }
 0x311   : > { %2566 = vmatpush1.msra.mxu0 %v2512_v60 }
 0x314   : > { %v2511_v56 = vld [vmem:[#allocation2] sm:$0xff] }
 0x315   : > { %2567 = vmatprep.subr.mxu0 %v2511_v56 }
 0x316   : > { %2568 = vmatpush1.msra.mxu0 %v2510_v47 }
 0x317   : > { %2708 = vmatmul.mubr.msk.f32.vlgmr.msra.gmra.mxu0 %vm2526_vm13, %v2509_v43 }
 0x318   : > { %v2524_v20 = vpop.permute.xlu0 %2523 }
 0x3d7   : > { %v2603_v61 = vpop.f32.mrf.mxu0 }
 0x3d8   : > { %v2604_v6 = vadd.f32 %v2603_v61, %v2524_v20 }
 0x3d9   : > { %v2605_v48 = vpop.f32.mrf.mxu0 }
 0x3da   : > { %v2608_v37 = vmax.f32 %v2604_v6, 0.0  ;;  %v2606_v54 = vadd.f32 %v2605_v48, %v2524_v20 }
 0x3dc   : > { %2610 = vst [vmem:[%s188_s23] sm:$0xff] %v2608_v37  ;;  %v2609_v40 = vmax.f32 %v2606_v54, 0.0 }
 0x3de   : > { %2611 = vst [vmem:[%s188_s23 + $0x8] sm:$0xff] %v2609_v40 }
 0x3df   : > { %2821 = shalt.err (!%p2818_p10)
}
 0x3e0   : > { %s2822_s26 = scalar_lea.hbm %s2625_s8, 256  ;;  %s2826_s28 = scalar_lea.hbm %s4649_s3, 512 }
 0x3e1   : > { %p2823_p0 = scmp.ne.s32.totalorder %s2625_s8, %s2822_s26  ;;  %p2827_p1 = scmp.lt.s32.totalorder %s2625_s8, %s4649_s3 }
 0x3e2   : > { %p2828_p3 = scmp.lt.s32.totalorder %s2826_s28, %s2822_s26 }
 0x3e3   : > { %p2824_p2 = pnand %p2823_p0, %p4803_p12 }
 0x3e4   : > { %p2829_p6 = por %p2828_p3, %p2827_p1 }
 0x3e5   : > { %p2825_p9 = pneg %p2824_p2 }
 0x3e7   : > { %p2830_p11 = pnand %p2829_p6, %p2825_p9 }
 0x3e9   : > { %2833 = shalt.err (!%p2830_p11)
}
 0x3ea   : > { %2718 = dma.vmem_to_hbm [thread:$0]  (%p4803_p12), %s2628_s4, 256, %s2625_s8, %s2613_s17  }
 0x3eb PF: > { %s2639_s9 = sand.u32 1, %s2860_s12   ;;  %p4804_p13 = scmp.ne.s32.totalorder %s4693_s25, 0 }
 0x3ec   : > { %p4805_p4 = scmp.ge.s32.totalorder %s2872_s15, 2  ;;  %s2640_s10 = scalar_lea.sflag [#allocation5], %s2639_s9 }
 0x3ee   : > { %p2725_p5 = pnand %p4805_p4, %p4804_p13 }
 0x3f0   : > { %p2726_p7 = pneg %p2725_p5 }
 0x3f2   : > { %2855 = dma.done.wait (%p2726_p7), %s2640_s10, 256  }
 0x3f3   : > { %2857 = vsyncadd (%p2726_p7), %s2640_s10, 4294967040  ;;  %p16_p8 = scmp.ge.s32.totalorder %s2938_s18, 4   ;;  %s4806_s12 = smov %s2864_s13 }
 0x3f4   : > { %s4807_s13 = smov %s2868_s14  ;;  %s4808_s14 = smov %s2950_s21 }
 0x3f5   : > { %s4809_s15 = smov %s2938_s18  ;;  %18 = sbr.rel (!%p16_p8) target bundleno = 5 (0x5), region = 77 }
 0x3fa   :  { %2645 = vsyncpa [#allocation4], 1 }
 0x3fb   :  { %2647 = vsyncpa [#allocation4 + $0x1], 1 }
 0x3fc   :  { %2648 = vsyncpa [#allocation5], 1 }
 0x3fd   :  { %2650 = vsyncpa [#allocation5 + $0x1], 1 }

</bundles_post_ra>
